<compile_context>
chip_gen: v7x
topology: tpu7x:2x2x1
jax: 0.10.0
libtpu: 0.0.40
codegen_flags: <defaults>
</compile_context>

<pallas_src>
import functools
import numpy as np
import jax
import jax.numpy as jnp
from jax.experimental import pallas as pl
from jax.experimental.pallas import tpu as pltpu


# ---------------------------------------------------------------------------
# Windowed real-DFT basis (window folded in, cos|sin fused, lane padded).
# ---------------------------------------------------------------------------
def _hann_window_np(n_fft: int) -> np.ndarray:
    # torch.hann_window default is periodic=True.
    n = np.arange(n_fft, dtype=np.float64)
    return 0.5 - 0.5 * np.cos(2.0 * np.pi * n / n_fft)


def _fused_dft_basis(n_fft: int, n_freq_pad: int) -> jnp.ndarray:
    """[n_fft, 2*n_freq_pad] bf16 basis = [hann*cos | hann*sin].

    Columns >= n_fft//2+1 inside each half are zero: they produce identical
    (zero) spectra for est and ref and so contribute exactly 0 to both the
    |mag| and the log-mag L1 terms (log terms cancel at the clamp floor).
    """
    n_freq = n_fft // 2 + 1
    n = np.arange(n_fft, dtype=np.float64)[:, None]
    k = np.arange(n_freq, dtype=np.float64)[None, :]
    ang = 2.0 * np.pi * n * k / n_fft
    w = _hann_window_np(n_fft)[:, None]
    cos_b = np.zeros((n_fft, n_freq_pad), dtype=np.float32)
    sin_b = np.zeros((n_fft, n_freq_pad), dtype=np.float32)
    cos_b[:, :n_freq] = (w * np.cos(ang)).astype(np.float32)
    sin_b[:, :n_freq] = (w * np.sin(ang)).astype(np.float32)
    return jnp.asarray(np.concatenate([cos_b, sin_b], axis=1),
                       dtype=jnp.bfloat16)


# ---------------------------------------------------------------------------
# Kernel: one fused bf16 matmul per frame block + vector partial-sum accum.
# ---------------------------------------------------------------------------
def _stft_l1_kernel(frames_ref, basis_ref, out_ref, acc_ref, *,
                    m_half, n_freq_pad, clamp_eps, pow_,
                    mag_weight, log_weight, blocks_per_chunk):
    b = pl.program_id(1)

    @pl.when(b == 0)
    def _init():
        acc_ref[...] = jnp.zeros_like(acc_ref)

    # Single fused MXU matmul for est+ref / cos+sin of this frame block.
    lhs = frames_ref[0]                       # (2*m_half, n_fft)       bf16
    rhs = basis_ref[...]                      # (n_fft, 2*n_freq_pad)   bf16
    prod = jnp.dot(lhs, rhs, preferred_element_type=jnp.float32)

    re = prod[:, :n_freq_pad]                 # lane-aligned slices
    im = prod[:, n_freq_pad:]
    msq = re * re + im * im                   # |X|^2 in f32
    e_msq = msq[:m_half]                      # est rows
    r_msq = msq[m_half:]                      # ref rows

    mag_diff = jnp.abs(jnp.sqrt(e_msq) - jnp.sqrt(r_msq))

    # log10(clamp(|X|, eps)^pow) == 0.5*pow*log10(max(|X|^2, eps^2))
    eps_sq = clamp_eps * clamp_eps
    log_diff = (0.5 * pow_) * jnp.abs(
        jnp.log10(jnp.maximum(e_msq, eps_sq)) -
        jnp.log10(jnp.maximum(r_msq, eps_sq)))

    # Elementwise VPU accumulation every step; no per-step cross-lane reduce.
    acc_ref[...] += mag_weight * mag_diff + log_weight * log_diff

    @pl.when(b == blocks_per_chunk - 1)
    def _finalize():
        # Single cross-lane reduction per chunk, broadcast into a lane-dense
        # (1, 128) output block (lane 0 is read back by the wrapper).
        out_ref[...] = jnp.zeros_like(out_ref) + jnp.sum(acc_ref[...])


def _stft_scale_weighted_sum(frames, basis, *, m_half, n_fft, n_freq_pad,
                             n_chunks, blocks_per_chunk, clamp_eps, pow_,
                             mag_weight, log_weight):
    """Returns sum over all frames/rows/freqs of
       mag_weight*| |E|-|R| | + log_weight*|log-mag diff|."""
    kernel = functools.partial(
        _stft_l1_kernel, m_half=m_half, n_freq_pad=n_freq_pad,
        clamp_eps=clamp_eps, pow_=pow_, mag_weight=mag_weight,
        log_weight=log_weight, blocks_per_chunk=blocks_per_chunk)

    def build(single_buffer_basis):
        basis_kwargs = (dict(pipeline_mode=pl.Buffered(1))
                        if single_buffer_basis else {})
        grid_spec = pltpu.PrefetchScalarGridSpec(
            num_scalar_prefetch=0,
            grid=(n_chunks, blocks_per_chunk),
            in_specs=[
                # Frame blocks: real pipelining over the reduction axis.
                pl.BlockSpec((1, 2 * m_half, n_fft),
                             lambda p, b: (p * blocks_per_chunk + b, 0, 0)),
                # Constant DFT basis: single VMEM buffer if supported
                # (constant index_map => fetched once, kept resident).
                pl.BlockSpec((n_fft, 2 * n_freq_pad),
                             lambda p, b: (0, 0), **basis_kwargs),
            ],
            out_specs=pl.BlockSpec((1, 128), lambda p, b: (0, p)),
            scratch_shapes=[pltpu.VMEM((m_half, n_freq_pad), jnp.float32)],
        )
        return pl.pallas_call(
            kernel,
            out_shape=jax.ShapeDtypeStruct((1, 128 * n_chunks), jnp.float32),
            grid_spec=grid_spec,
            compiler_params=pltpu.CompilerParams(
                dimension_semantics=("parallel", "arbitrary"),
                vmem_limit_bytes=40 * 1024 * 1024),
        )

    try:
        partial_sums = build(True)(frames, basis)
    except Exception:
        # Fallback to default double-buffering if Buffered(1) is unsupported.
        partial_sums = build(False)(frames, basis)

    # Lane 0 of each chunk's 128-wide output block carries that chunk's sum.
    return jnp.sum(partial_sums[0, ::128])


# ---------------------------------------------------------------------------
# Public wrapper.
# ---------------------------------------------------------------------------
def multi_scale_stft_loss(est, ref, *, window_lengths=(2048, 512),
                          clamp_eps=1e-5, mag_weight=1.0, log_weight=1.0,
                          pow_=2.0, n_parallel_chunks=2, target_m_half=128):
    """Multi-scale STFT loss (forward) matching the PyTorch reference."""
    assert est.shape == ref.shape and est.ndim == 3, (est.shape, ref.shape)
    B, C, T = est.shape
    N = B * C
    Np = max(8, -(-N // 8) * 8)                      # sublane-aligned rows

    est2 = est.reshape(N, T).astype(jnp.float32)
    ref2 = ref.reshape(N, T).astype(jnp.float32)
    if Np != N:
        # Zero rows produce identical spectra for est/ref -> 0 contribution.
        est2 = jnp.pad(est2, ((0, Np - N), (0, 0)))
        ref2 = jnp.pad(ref2, ((0, Np - N), (0, 0)))

    # Reflect-pad once with the maximum pad; smaller scales reuse inner slices
    # of the same padded signal (reflect padding is nested for pad < T).
    max_pad = max(int(w) for w in window_lengths) // 2
    assert max_pad < T, "reflect padding requires T > max(window)//2"
    est_p = jnp.pad(est2, ((0, 0), (max_pad, max_pad)), mode="reflect")
    ref_p = jnp.pad(ref2, ((0, 0), (max_pad, max_pad)), mode="reflect")

    loss = jnp.float32(0.0)
    for w in window_lengths:
        n_fft = int(w)
        hop = n_fft // 4
        pad = n_fft // 2
        n_freq = n_fft // 2 + 1
        n_freq_pad = -(-n_freq // 128) * 128         # lane-dense spectrum width
        n_frames = 1 + T // hop                      # torch.stft, center=True

        frames_per_block = max(1, -(-target_m_half // Np))
        m_half = frames_per_block * Np               # multiple of 8
        chunk = frames_per_block * n_parallel_chunks
        n_frames_pad = -(-n_frames // chunk) * chunk  # zero frames: 0 contribution
        n_blocks = n_frames_pad // frames_per_block
        blocks_per_chunk = n_blocks // n_parallel_chunks

        # Pre-frame outside the kernel (aligned loads inside the kernel even
        # for small hops): [n_blocks, m_half, n_fft] per signal, est rows
        # stacked on top of ref rows -> [n_blocks, 2*m_half, n_fft] bf16.
        # TODO(synk): this materializes ~4x-overlapped frames in HBM; a
        # streaming in-kernel framing variant would trade HBM for DMA logic.
        offset = max_pad - pad
        idx = (offset + np.arange(n_frames)[:, None] * hop
               + np.arange(n_fft)[None, :])

        def frame(x_p):
            f = jnp.transpose(x_p[:, idx], (1, 0, 2))        # [F, Np, n_fft]
            f = jnp.pad(f, ((0, n_frames_pad - n_frames), (0, 0), (0, 0)))
            return f.reshape(n_blocks, m_half, n_fft)

        frames = jnp.concatenate([frame(est_p), frame(ref_p)],
                                 axis=1).astype(jnp.bfloat16)
        basis = _fused_dft_basis(n_fft, n_freq_pad)

        wsum = _stft_scale_weighted_sum(
            frames, basis, m_half=m_half, n_fft=n_fft, n_freq_pad=n_freq_pad,
            n_chunks=n_parallel_chunks, blocks_per_chunk=blocks_per_chunk,
            clamp_eps=clamp_eps, pow_=pow_,
            mag_weight=mag_weight, log_weight=log_weight)

        # L1Loss('mean') denominator over the TRUE (unpadded) spectrogram size.
        count = jnp.float32(N * n_freq * n_frames)
        loss = loss + wsum / count
    return loss


# ---------------------------------------------------------------------------
# Pure-JAX f32 reference (for a sanity check of the bf16 kernel path).
# ---------------------------------------------------------------------------
def _reference_loss(est, ref, window_lengths, clamp_eps=1e-5,
                    mag_weight=1.0, log_weight=1.0, pow_=2.0):
    B, C, T = est.shape
    e = est.reshape(-1, T).astype(jnp.float32)
    r = ref.reshape(-1, T).astype(jnp.float32)
    loss = jnp.float32(0.0)
    for w in window_lengths:
        n_fft = int(w)
        hop = n_fft // 4
        pad = n_fft // 2
        win = jnp.asarray(_hann_window_np(n_fft), dtype=jnp.float32)
        ep = jnp.pad(e, ((0, 0), (pad, pad)), mode="reflect")
        rp = jnp.pad(r, ((0, 0), (pad, pad)), mode="reflect")
        n_frames = 1 + (ep.shape[1] - n_fft) // hop
        idx = np.arange(n_frames)[:, None] * hop + np.arange(n_fft)[None, :]
        emag = jnp.abs(jnp.fft.rfft(ep[:, idx] * win, axis=-1))
        rmag = jnp.abs(jnp.fft.rfft(rp[:, idx] * win, axis=-1))
        elog = pow_ * jnp.log10(jnp.maximum(emag, clamp_eps))
        rlog = pow_ * jnp.log10(jnp.maximum(rmag, clamp_eps))
        loss = loss + log_weight * jnp.mean(jnp.abs(elog - rlog))
        loss = loss + mag_weight * jnp.mean(jnp.abs(emag - rmag))
    return loss


if __name__ == "__main__":
    key = jax.random.PRNGKey(0)
    k1, k2 = jax.random.split(key)
    # Small demo shapes: B=2, C=2, T=256 with scaled-down window lengths.
    B, C, T = 2, 2, 256
    window_lengths = (64, 16)
    est = jax.random.normal(k1, (B, C, T), dtype=jnp.float32)
    ref = jax.random.normal(k2, (B, C, T), dtype=jnp.float32)

    loss = multi_scale_stft_loss(est, ref, window_lengths=window_lengths)
    loss = jax.block_until_ready(loss)
    assert bool(jnp.isfinite(loss)), loss

    # Sanity check vs. a pure-JAX f32 reference (kernel matmuls run in bf16).
    ref_loss = float(jax.block_until_ready(
        _reference_loss(est, ref, window_lengths)))
    rel_err = abs(float(loss) - ref_loss) / max(abs(ref_loss), 1e-8)
    assert rel_err < 5e-2, (float(loss), ref_loss, rel_err)

    print("KERNEL_OK")
</pallas_src>

<mosaic_0001>
module attributes {stable_mosaic.version = 11 : i64} {
  func.func @_stft_l1_kernel(%arg0: i32, %arg1: i32, %arg2: memref<1x256x64xbf16, #tpu.memory_space<vmem>>, %arg3: memref<64x256xbf16, #tpu.memory_space<vmem>>, %arg4: memref<1x128xf32, #tpu.memory_space<vmem>>, %arg5: memref<128x128xf32, #tpu.memory_space<vmem>>) attributes {dimension_semantics = [#tpu.dimension_semantics<parallel>, #tpu.dimension_semantics<arbitrary>], iteration_bounds = array<i64: 2, 1>, scalar_prefetch = 0 : i64, scratch_operands = 1 : i64, tpu.core_type = #tpu.core_type<tc>, window_params = [{transform_indices = @transform_0, window_bounds = array<i64: 1, 256, 64>}, {pipeline_mode = #tpu.pipeline_mode<synchronous>, transform_indices = @transform_1, window_bounds = array<i64: 64, 256>}, {transform_indices = @transform_2, window_bounds = array<i64: 1, 128>}]} {
    %c0_i32 = arith.constant 0 : i32
    %0 = arith.cmpi eq, %arg1, %c0_i32 : i32
    %1 = arith.extui %0 : i1 to i32
    %c0_i32_0 = arith.constant 0 : i32
    %2 = arith.cmpi ne, %1, %c0_i32_0 : i32
    scf.if %2 {
      %cst_18 = arith.constant 0.000000e+00 : f32
      %43 = vector.broadcast %cst_18 : f32 to vector<128x128xf32>
      %c0_19 = arith.constant 0 : index
      %c0_20 = arith.constant 0 : index
      %44 = vector.load %arg5[%c0_19, %c0_20] : memref<128x128xf32, #tpu.memory_space<vmem>>, vector<128x128xf32>
      tpu.vector_store %arg5[%c0_19, %c0_20], %43 {strides = array<i32>} : memref<128x128xf32, #tpu.memory_space<vmem>>, vector<128x128xf32>,
    } else {
    }
    %c0 = arith.constant 0 : index
    %c0_1 = arith.constant 0 : index
    %c0_2 = arith.constant 0 : index
    %3 = vector.load %arg2[%c0, %c0_1, %c0_2] : memref<1x256x64xbf16, #tpu.memory_space<vmem>>, vector<1x256x64xbf16>
    %4 = vector.shape_cast %3 : vector<1x256x64xbf16> to vector<256x64xbf16>
    %c0_3 = arith.constant 0 : index
    %c0_4 = arith.constant 0 : index
    %5 = vector.load %arg3[%c0_3, %c0_4] : memref<64x256xbf16, #tpu.memory_space<vmem>>, vector<64x256xbf16>
    %cst = arith.constant dense<0.000000e+00> : vector<256x256xf32>
    %6 = tpu.matmul %4, %5, %cst {dimension_numbers = #tpu.dot_dimension_numbers<[1], [0], [0], [1], [0, 0, 1, 1], [], []>} : vector<256x64xbf16>, vector<64x256xbf16>, vector<256x256xf32> -> vector<256x256xf32>
    %7 = vector.extract_strided_slice %6 {offsets = [0, 0], sizes = [256, 128], strides = [1, 1]} : vector<256x256xf32> to vector<256x128xf32>
    %8 = vector.extract_strided_slice %6 {offsets = [0, 128], sizes = [256, 128], strides = [1, 1]} : vector<256x256xf32> to vector<256x128xf32>
    %9 = arith.mulf %7, %7 : vector<256x128xf32>
    %10 = arith.mulf %8, %8 : vector<256x128xf32>
    %11 = arith.addf %9, %10 : vector<256x128xf32>
    %12 = vector.extract_strided_slice %11 {offsets = [0, 0], sizes = [128, 128], strides = [1, 1]} : vector<256x128xf32> to vector<128x128xf32>
    %13 = vector.extract_strided_slice %11 {offsets = [128, 0], sizes = [128, 128], strides = [1, 1]} : vector<256x128xf32> to vector<128x128xf32>
    %14 = math.sqrt %12 : vector<128x128xf32>
    %15 = math.sqrt %13 : vector<128x128xf32>
    %16 = arith.subf %14, %15 : vector<128x128xf32>
    %17 = math.absf %16 : vector<128x128xf32>
    %cst_5 = arith.constant 1.000000e-10 : f32
    %18 = vector.broadcast %cst_5 : f32 to vector<128x128xf32>
    %19 = arith.maximumf %12, %18 : vector<128x128xf32>
    %20 = math.log %19 : vector<128x128xf32>
    %cst_6 = arith.constant 0.434294492 : f32
    %21 = vector.broadcast %cst_6 : f32 to vector<128x128xf32>
    %22 = arith.mulf %20, %21 : vector<128x128xf32>
    %cst_7 = arith.constant 1.000000e-10 : f32
    %23 = vector.broadcast %cst_7 : f32 to vector<128x128xf32>
    %24 = arith.maximumf %13, %23 : vector<128x128xf32>
    %25 = math.log %24 : vector<128x128xf32>
    %cst_8 = arith.constant 0.434294492 : f32
    %26 = vector.broadcast %cst_8 : f32 to vector<128x128xf32>
    %27 = arith.mulf %25, %26 : vector<128x128xf32>
    %28 = arith.subf %22, %27 : vector<128x128xf32>
    %29 = math.absf %28 : vector<128x128xf32>
    %cst_9 = arith.constant 1.000000e+00 : f32
    %30 = vector.broadcast %cst_9 : f32 to vector<128x128xf32>
    %31 = arith.mulf %30, %29 : vector<128x128xf32>
    %c0_10 = arith.constant 0 : index
    %c0_11 = arith.constant 0 : index
    %32 = vector.load %arg5[%c0_10, %c0_11] : memref<128x128xf32, #tpu.memory_space<vmem>>, vector<128x128xf32>
    %cst_12 = arith.constant 1.000000e+00 : f32
    %33 = vector.broadcast %cst_12 : f32 to vector<128x128xf32>
    %34 = arith.mulf %33, %17 : vector<128x128xf32>
    %cst_13 = arith.constant 1.000000e+00 : f32
    %35 = vector.broadcast %cst_13 : f32 to vector<128x128xf32>
    %36 = arith.mulf %35, %31 : vector<128x128xf32>
    %37 = arith.addf %34, %36 : vector<128x128xf32>
    %38 = arith.addf %32, %37 : vector<128x128xf32>
    %c0_14 = arith.constant 0 : index
    %c0_15 = arith.constant 0 : index
    %39 = vector.load %arg5[%c0_14, %c0_15] : memref<128x128xf32, #tpu.memory_space<vmem>>, vector<128x128xf32>
    tpu.vector_store %arg5[%c0_14, %c0_15], %38 {strides = array<i32>} : memref<128x128xf32, #tpu.memory_space<vmem>>, vector<128x128xf32>,
    %c0_i32_16 = arith.constant 0 : i32
    %40 = arith.cmpi eq, %arg1, %c0_i32_16 : i32
    %41 = arith.extui %40 : i1 to i32
    %c0_i32_17 = arith.constant 0 : i32
    %42 = arith.cmpi ne, %41, %c0_i32_17 : i32
    scf.if %42 {
      %cst_18 = arith.constant 0.000000e+00 : f32
      %43 = vector.broadcast %cst_18 : f32 to vector<1x128xf32>
      %c0_19 = arith.constant 0 : index
      %c0_20 = arith.constant 0 : index
      %44 = vector.load %arg5[%c0_19, %c0_20] : memref<128x128xf32, #tpu.memory_space<vmem>>, vector<128x128xf32>
      %45 = vector.shape_cast %44 : vector<128x128xf32> to vector<1x128x128xf32>
      %cst_21 = arith.constant dense<0.000000e+00> : vector<1xf32>
      %46 = vector.multi_reduction <add>, %45, %cst_21 [1, 2] : vector<1x128x128xf32> to vector<1xf32>
      %47 = vector.shape_cast %46 : vector<1xf32> to vector<1x1x1xf32>
      %48 = vector.extract %47[0, 0, 0] : f32 from vector<1x1x1xf32>
      %49 = vector.broadcast %48 : f32 to vector<1x128xf32>
      %50 = arith.addf %43, %49 : vector<1x128xf32>
      %c0_22 = arith.constant 0 : index
      %c0_23 = arith.constant 0 : index
      %51 = vector.load %arg4[%c0_22, %c0_23] : memref<1x128xf32, #tpu.memory_space<vmem>>, vector<1x128xf32>
      tpu.vector_store %arg4[%c0_22, %c0_23], %50 {strides = array<i32>} : memref<1x128xf32, #tpu.memory_space<vmem>>, vector<1x128xf32>,
    } else {
    }
    return
  }
  func.func @transform_0(%arg0: i32, %arg1: i32) -> (i32, i32, i32) {
    %c1_i32 = arith.constant 1 : i32
    %0 = arith.muli %arg0, %c1_i32 : i32
    %1 = arith.addi %0, %arg1 : i32
    %c0_i32 = arith.constant 0 : i32
    %c0_i32_0 = arith.constant 0 : i32
    %c0_i32_1 = arith.constant 0 : i32
    return %1, %c0_i32, %c0_i32_0 : i32, i32, i32
  }
  func.func @transform_1(%arg0: i32, %arg1: i32) -> (i32, i32) {
    %c0_i32 = arith.constant 0 : i32
    %c0_i32_0 = arith.constant 0 : i32
    %c0_i32_1 = arith.constant 0 : i32
    return %c0_i32, %c0_i32_0 : i32, i32
  }
  func.func @transform_2(%arg0: i32, %arg1: i32) -> (i32, i32) {
    %c0_i32 = arith.constant 0 : i32
    %c0_i32_0 = arith.constant 0 : i32
    return %c0_i32, %arg0 : i32, i32
  }
}

module attributes {stable_mosaic.version = 11 : i64} {
  func.func @_stft_l1_kernel(%arg0: i32, %arg1: i32, %arg2: memref<1x256x64xbf16, #tpu.memory_space<vmem>>, %arg3: memref<64x256xbf16, #tpu.memory_space<vmem>>, %arg4: memref<1x128xf32, #tpu.memory_space<vmem>>, %arg5: memref<128x128xf32, #tpu.memory_space<vmem>>) attributes {dimension_semantics = [#tpu.dimension_semantics<parallel>, #tpu.dimension_semantics<arbitrary>], iteration_bounds = array<i64: 2, 1>, scalar_prefetch = 0 : i64, scratch_operands = 1 : i64, tpu.core_type = #tpu.core_type<tc>, window_params = [{transform_indices = @transform_0, window_bounds = array<i64: 1, 256, 64>}, {pipeline_mode = #tpu.pipeline_mode<synchronous>, transform_indices = @transform_1, window_bounds = array<i64: 64, 256>}, {transform_indices = @transform_2, window_bounds = array<i64: 1, 128>}]} {
    %c0_i32 = arith.constant 0 : i32
    %0 = arith.cmpi eq, %arg1, %c0_i32 : i32
    %1 = arith.extui %0 : i1 to i32
    %c0_i32_0 = arith.constant 0 : i32
    %2 = arith.cmpi ne, %1, %c0_i32_0 : i32
    scf.if %2 {
      %cst_18 = arith.constant 0.000000e+00 : f32
      %43 = vector.broadcast %cst_18 : f32 to vector<128x128xf32>
      %c0_19 = arith.constant 0 : index
      %c0_20 = arith.constant 0 : index
      %44 = vector.load %arg5[%c0_19, %c0_20] : memref<128x128xf32, #tpu.memory_space<vmem>>, vector<128x128xf32>
      tpu.vector_store %arg5[%c0_19, %c0_20], %43 {strides = array<i32>} : memref<128x128xf32, #tpu.memory_space<vmem>>, vector<128x128xf32>,
    } else {
    }
    %c0 = arith.constant 0 : index
    %c0_1 = arith.constant 0 : index
    %c0_2 = arith.constant 0 : index
    %3 = vector.load %arg2[%c0, %c0_1, %c0_2] : memref<1x256x64xbf16, #tpu.memory_space<vmem>>, vector<1x256x64xbf16>
    %4 = vector.shape_cast %3 : vector<1x256x64xbf16> to vector<256x64xbf16>
    %c0_3 = arith.constant 0 : index
    %c0_4 = arith.constant 0 : index
    %5 = vector.load %arg3[%c0_3, %c0_4] : memref<64x256xbf16, #tpu.memory_space<vmem>>, vector<64x256xbf16>
    %cst = arith.constant dense<0.000000e+00> : vector<256x256xf32>
    %6 = tpu.matmul %4, %5, %cst {dimension_numbers = #tpu.dot_dimension_numbers<[1], [0], [0], [1], [0, 0, 1, 1], [], []>} : vector<256x64xbf16>, vector<64x256xbf16>, vector<256x256xf32> -> vector<256x256xf32>
    %7 = vector.extract_strided_slice %6 {offsets = [0, 0], sizes = [256, 128], strides = [1, 1]} : vector<256x256xf32> to vector<256x128xf32>
    %8 = vector.extract_strided_slice %6 {offsets = [0, 128], sizes = [256, 128], strides = [1, 1]} : vector<256x256xf32> to vector<256x128xf32>
    %9 = arith.mulf %7, %7 : vector<256x128xf32>
    %10 = arith.mulf %8, %8 : vector<256x128xf32>
    %11 = arith.addf %9, %10 : vector<256x128xf32>
    %12 = vector.extract_strided_slice %11 {offsets = [0, 0], sizes = [128, 128], strides = [1, 1]} : vector<256x128xf32> to vector<128x128xf32>
    %13 = vector.extract_strided_slice %11 {offsets = [128, 0], sizes = [128, 128], strides = [1, 1]} : vector<256x128xf32> to vector<128x128xf32>
    %14 = math.sqrt %12 : vector<128x128xf32>
    %15 = math.sqrt %13 : vector<128x128xf32>
    %16 = arith.subf %14, %15 : vector<128x128xf32>
    %17 = math.absf %16 : vector<128x128xf32>
    %cst_5 = arith.constant 1.000000e-10 : f32
    %18 = vector.broadcast %cst_5 : f32 to vector<128x128xf32>
    %19 = arith.maximumf %12, %18 : vector<128x128xf32>
    %20 = math.log %19 : vector<128x128xf32>
    %cst_6 = arith.constant 0.434294492 : f32
    %21 = vector.broadcast %cst_6 : f32 to vector<128x128xf32>
    %22 = arith.mulf %20, %21 : vector<128x128xf32>
    %cst_7 = arith.constant 1.000000e-10 : f32
    %23 = vector.broadcast %cst_7 : f32 to vector<128x128xf32>
    %24 = arith.maximumf %13, %23 : vector<128x128xf32>
    %25 = math.log %24 : vector<128x128xf32>
    %cst_8 = arith.constant 0.434294492 : f32
    %26 = vector.broadcast %cst_8 : f32 to vector<128x128xf32>
    %27 = arith.mulf %25, %26 : vector<128x128xf32>
    %28 = arith.subf %22, %27 : vector<128x128xf32>
    %29 = math.absf %28 : vector<128x128xf32>
    %cst_9 = arith.constant 1.000000e+00 : f32
    %30 = vector.broadcast %cst_9 : f32 to vector<128x128xf32>
    %31 = arith.mulf %30, %29 : vector<128x128xf32>
    %c0_10 = arith.constant 0 : index
    %c0_11 = arith.constant 0 : index
    %32 = vector.load %arg5[%c0_10, %c0_11] : memref<128x128xf32, #tpu.memory_space<vmem>>, vector<128x128xf32>
    %cst_12 = arith.constant 1.000000e+00 : f32
    %33 = vector.broadcast %cst_12 : f32 to vector<128x128xf32>
    %34 = arith.mulf %33, %17 : vector<128x128xf32>
    %cst_13 = arith.constant 1.000000e+00 : f32
    %35 = vector.broadcast %cst_13 : f32 to vector<128x128xf32>
    %36 = arith.mulf %35, %31 : vector<128x128xf32>
    %37 = arith.addf %34, %36 : vector<128x128xf32>
    %38 = arith.addf %32, %37 : vector<128x128xf32>
    %c0_14 = arith.constant 0 : index
    %c0_15 = arith.constant 0 : index
    %39 = vector.load %arg5[%c0_14, %c0_15] : memref<128x128xf32, #tpu.memory_space<vmem>>, vector<128x128xf32>
    tpu.vector_store %arg5[%c0_14, %c0_15], %38 {strides = array<i32>} : memref<128x128xf32, #tpu.memory_space<vmem>>, vector<128x128xf32>,
    %c0_i32_16 = arith.constant 0 : i32
    %40 = arith.cmpi eq, %arg1, %c0_i32_16 : i32
    %41 = arith.extui %40 : i1 to i32
    %c0_i32_17 = arith.constant 0 : i32
    %42 = arith.cmpi ne, %41, %c0_i32_17 : i32
    scf.if %42 {
      %cst_18 = arith.constant 0.000000e+00 : f32
      %43 = vector.broadcast %cst_18 : f32 to vector<1x128xf32>
      %c0_19 = arith.constant 0 : index
      %c0_20 = arith.constant 0 : index
      %44 = vector.load %arg5[%c0_19, %c0_20] : memref<128x128xf32, #tpu.memory_space<vmem>>, vector<128x128xf32>
      %45 = vector.shape_cast %44 : vector<128x128xf32> to vector<1x128x128xf32>
      %cst_21 = arith.constant dense<0.000000e+00> : vector<1xf32>
      %46 = vector.multi_reduction <add>, %45, %cst_21 [1, 2] : vector<1x128x128xf32> to vector<1xf32>
      %47 = vector.shape_cast %46 : vector<1xf32> to vector<1x1x1xf32>
      %48 = vector.extract %47[0, 0, 0] : f32 from vector<1x1x1xf32>
      %49 = vector.broadcast %48 : f32 to vector<1x128xf32>
      %50 = arith.addf %43, %49 : vector<1x128xf32>
      %c0_22 = arith.constant 0 : index
      %c0_23 = arith.constant 0 : index
      %51 = vector.load %arg4[%c0_22, %c0_23] : memref<1x128xf32, #tpu.memory_space<vmem>>, vector<1x128xf32>
      tpu.vector_store %arg4[%c0_22, %c0_23], %50 {strides = array<i32>} : memref<1x128xf32, #tpu.memory_space<vmem>>, vector<1x128xf32>,
    } else {
    }
    return
  }
  func.func @transform_0(%arg0: i32, %arg1: i32) -> (i32, i32, i32) {
    %c1_i32 = arith.constant 1 : i32
    %0 = arith.muli %arg0, %c1_i32 : i32
    %1 = arith.addi %0, %arg1 : i32
    %c0_i32 = arith.constant 0 : i32
    %c0_i32_0 = arith.constant 0 : i32
    %c0_i32_1 = arith.constant 0 : i32
    return %1, %c0_i32, %c0_i32_0 : i32, i32, i32
  }
  func.func @transform_1(%arg0: i32, %arg1: i32) -> (i32, i32) {
    %c0_i32 = arith.constant 0 : i32
    %c0_i32_0 = arith.constant 0 : i32
    %c0_i32_1 = arith.constant 0 : i32
    return %c0_i32, %c0_i32_0 : i32, i32
  }
  func.func @transform_2(%arg0: i32, %arg1: i32) -> (i32, i32) {
    %c0_i32 = arith.constant 0 : i32
    %c0_i32_0 = arith.constant 0 : i32
    return %c0_i32, %arg0 : i32, i32
  }
}

</mosaic_0001>

<bundles_post_ra>
// kernel: tpu_custom_call.1
= control target key start
LH: loop header
LB: loop body
LE: loop exit
PB: predicated region body
PF: predicated region fallthrough
CT: control target
= control target key end

     0   :  { %7 = vsyncpa [#allocation4], 0  ;;  %s2517_s0 = inlined_call_operand.vmem [shape: bf16[2,256,64], index: 0, kind: input, shape index: {}]   ;;  %s2518_s1 = inlined_call_operand.vmem [shape: bf16[64,256], index: 1, kind: input, shape index: {}]   ;;  %s2519_s2 = inlined_call_operand.hbm [shape: f32[1,256], index: 2, kind: output, shape index: {}]  }
   0x1   :  { %9 = vsyncpa [#allocation4 + $0x1], 0  ;;  %s1651_s9 = smov 0   ;;  %s1653_s10 = smov 0  }
   0x2   :  { %s1655_s11 = smov 0   ;;  %s1657_s12 = smov 0  }
   0x3   :  { %s1659_s13 = smov 0   ;;  %s1661_s14 = smov 0  }
   0x4 LB: > { %s1281_s15 = sadd.s32 4294967295, %s1632_s14   ;;  %s1282_s16 = sadd.s32 4294967294, %s1632_s14   ;;  %s1632_s14 = sphi %s1661_s14, %s15_s14   ;;  %s1628_s13 = sphi %s1659_s13, %s2553_s13   ;;  %s1624_s12 = sphi %s1657_s12, %s2552_s12   ;;  %s1620_s11 = sphi %s1655_s11, %s2551_s11   ;;  %s1616_s10 = sphi %s1653_s10, %s2550_s10   ;;  %s1612_s9 = sphi %s1651_s9, %s2549_s9  }
   0x5   : > { %s27_s17 = sadd.s32 1, %s1628_s13  ;;  %s83_s18 = sadd.s32 1, %s1620_s11 }
   0x6   : > { %p29_p0 = scmp.ge.s32.totalorder %s27_s17, 2  ;;  %p93_p1 = scmp.ne.s32.totalorder %s1620_s11, %s1616_s10 }
   0x7   : > { %p94_p2 = scmp.eq.s32.totalorder %s1281_s15, 1  ;;  %p99_p3 = scmp.ne.s32.totalorder %s1616_s10, %s1612_s9 }
   0x8   : > { %s2555_s17 = smov (%p29_p0, %s27_s17), 0  ;;  %p100_p5 = scmp.eq.s32.totalorder %s1282_s16, 1 }
   0x9   : > { %p1691_p4 = por %p94_p2, %p93_p1  ;;  %s80_s20 = ssub.s32 %s1628_s13, %s2555_s17 }
   0xa   : > { %p1285_p6 = scmp.ge.s32.totalorder %s1632_s14, 1  ;;  %p81_p7 = scmp.eq.s32.totalorder %s80_s20, 0 }
   0xb   : > { %p1698_p8 = por %p100_p5, %p99_p3  ;;  %p131_p9 = scmp.lt.s32.totalorder %s1632_s14, 3 }
   0xc   : > { %s1704_s22 = scalar_select %p81_p7, %s1620_s11, %s83_s18  }
   0xd   : > { %p132_p10 = pnand %p1285_p6, %p131_p9 }
   0xf   : > { %135 = sbr.rel (%p132_p10) target bundleno = 629 (0x275), region = 28 }
  0x16   : > { %v1398_v0 = vld [vmem:[%s2518_s1 + $0x4] ss:$8 sps:$4 sm:$0xff]   ;;  %p154_p11 = scmp.lt.s32.totalorder %s1624_s12, 1  ;;  %v1400_v1 = vld [vmem:[%s2518_s1] ss:$8 sps:$4 sm:$0xff]   ;;  %v1634_v2 = vmov 0  }
  0x17   : > { %422 = vmatprep.mubr.bf16.mxu0 %v1634_v2  ;;  %502 = vmatprep.mubr.bf16.mxu1 %v1634_v2  ;;  %v1401_v3 = vld [vmem:[%s2518_s1 + $0x14] ss:$8 sps:$4 sm:$0xff]   ;;  %v1403_v4 = vld [vmem:[%s2518_s1 + $0x10] ss:$8 sps:$4 sm:$0xff]   ;;  %v1404_v5 = vld [vmem:[%s2518_s1 + $0x24] ss:$8 sps:$4 sm:$0xff]  }
  0x18   : > { %390 = vmatprep.subr.bf16.mxu0 %v1398_v0  ;;  %1332 = vmatprep.subr.bf16.mxu1 %v1398_v0  ;;  %s155_s29 = scalar_select %p154_p11, %s1624_s12, 1  ;;  %v1406_v6 = vld [vmem:[%s2518_s1 + $0x20] ss:$8 sps:$4 sm:$0xff]   ;;  %v1407_v7 = vld [vmem:[%s2518_s1 + $0x34] ss:$8 sps:$4 sm:$0xff]   ;;  %vm341_vm0 = vcmask 523264  }
  0x19   : > { %391 = vmatpush1.bf16.msra.mxu0 %v1400_v1  ;;  %1336 = vmatpush1.bf16.msra.mxu1 %v1400_v1  ;;  %v1409_v8 = vld [vmem:[%s2518_s1 + $0x30] ss:$8 sps:$4 sm:$0xff]   ;;  %s151_s26 = sand.u32 1, %s1616_s10  }
  0x1a   : > { %392 = vmatprep.subr.bf16.mxu0 %v1401_v3  ;;  %1333 = vmatprep.subr.bf16.mxu1 %v1401_v3  ;;  %s1331_s6 = sshll.u32 %s155_s29, 7  ;;  %s152_s27 = scalar_lea.vmem [#allocation3], %s151_s26 }
  0x1b   : > { %s1728_s15 = scalar_lea.vmem %s2517_s0, %s1331_s6  ;;  %s1218_s28 = sshll.u32 %s152_s27, 4  ;;  %s2467_s28 = int_to_ptr.vmem [resolvable:$true] %s1218_s28 }
  0x1c   : > { %v1410_v9 = vld [vmem:[%s1728_s15] sm:$0xff]   ;;  %v1412_v11 = vld [vmem:[%s1728_s15 + $0x8] sm:$0xff]   ;;  %v1414_v13 = vld [vmem:[%s1728_s15 + $0x10] sm:$0xff]   ;;  %s1328_s29 = sshll.u32 %s1624_s12, 4  ;;  %s1206_s6 = scalar_lea.sflag [#allocation4], %s151_s26 }
  0x1d   : > { %393 = vmatpush1.bf16.msra.mxu0 %v1403_v4  ;;  %1337 = vmatpush1.bf16.msra.mxu1 %v1403_v4  ;;  %v1411_v10 = vld [vmem:[%s1728_s15 + $0x40] sm:$0xff]   ;;  %v1413_v12 = vld [vmem:[%s1728_s15 + $0x48] sm:$0xff]   ;;  %v1415_v14 = vld [vmem:[%s1728_s15 + $0x50] sm:$0xff]   ;;  %s2472_s5 = scalar_lea.hbm %s2519_s2, %s1328_s29  ;;  %s1554_s7 = scalar_lea.vmem %s2467_s28, 16 }
  0x1e   : > { %394 = vmatprep.subr.bf16.mxu0 %v1404_v5  ;;  %1334 = vmatprep.subr.bf16.mxu1 %v1404_v5  ;;  %v1416_v15 = vld [vmem:[%s1728_s15 + $0x18] sm:$0xff]   ;;  %v1418_v17 = vld [vmem:[%s1728_s15 + $0x20] sm:$0xff]   ;;  %v1420_v19 = vld [vmem:[%s1728_s15 + $0x28] sm:$0xff]   ;;  %p1555_p12 = scmp.ne.s32.totalorder %s2467_s28, %s1554_s7  ;;  %s1635_s12 = smov [#allocation3]  }
  0x1f   : > { %v1417_v16 = vld [vmem:[%s1728_s15 + $0x58] sm:$0xff]   ;;  %v1419_v18 = vld [vmem:[%s1728_s15 + $0x60] sm:$0xff]   ;;  %v1421_v20 = vld [vmem:[%s1728_s15 + $0x68] sm:$0xff]   ;;  %s1558_s8 = sshll.u32 %s1635_s12, 4  ;;  %s1559_s8 = int_to_ptr.vmem [resolvable:$false] %s1558_s8 }
  0x20   : > { %v1422_v21 = vld [vmem:[%s1728_s15 + $0x30] sm:$0xff]   ;;  %v1424_v23 = vld [vmem:[%s1728_s15 + $0x38] sm:$0xff]   ;;  %p1556_p13 = pnand %p1555_p12, %p1691_p4  ;;  %p1561_p1 = scmp.lt.s32.totalorder %s2467_s28, %s1559_s8 }
  0x21   : > { %395 = vmatpush1.bf16.msra.mxu0 %v1406_v6  ;;  %1338 = vmatpush1.bf16.msra.mxu1 %v1406_v6  ;;  %v1423_v22 = vld [vmem:[%s1728_s15 + $0x70] sm:$0xff]   ;;  %v1425_v24 = vld [vmem:[%s1728_s15 + $0x78] sm:$0xff]   ;;  %s1560_s15 = scalar_lea.vmem %s1559_s8, 32 }
  0x22   : > { %396 = vmatprep.subr.bf16.mxu0 %v1407_v7  ;;  %1335 = vmatprep.subr.bf16.mxu1 %v1407_v7  ;;  %p1557_p0 = pneg %p1556_p13  ;;  %p1562_p2 = scmp.lt.s32.totalorder %s1560_s15, %s1554_s7 }
  0x24   : > { %p1563_p3 = por %p1562_p2, %p1561_p1 }
  0x25   : > { %397 = vmatpush1.bf16.msra.mxu0 %v1409_v8  ;;  %1339 = vmatpush1.bf16.msra.mxu1 %v1409_v8 }
  0x26   : > { %p1564_p5 = pnand %p1563_p3, %p1557_p0 }
  0x28   : > { %1312 = vmatmul.mubr.msk.bf16.vlgmr.msra.gmra.mrb[0].mxu0 %vm341_vm0, %v1410_v9  ;;  %1320 = vmatmul.mubr.msk.bf16.vlgmr.msra.gmra.mrb[0].mxu1 %vm341_vm0, %v1411_v10 }
  0x29   : > { %432 = vmatprep.mubr.bf16.mxu0 %v1634_v2  ;;  %512 = vmatprep.mubr.bf16.mxu1 %v1634_v2 }
  0x30   : > { %1313 = vmatmul.mubr.msk.bf16.gmra.mrb[4].mxu0 %vm341_vm0, %v1412_v11  ;;  %1321 = vmatmul.mubr.msk.bf16.gmra.mrb[4].mxu1 %vm341_vm0, %v1413_v12 }
  0x31   : > { %442 = vmatprep.mubr.bf16.mxu0 %v1634_v2  ;;  %522 = vmatprep.mubr.bf16.mxu1 %v1634_v2 }
  0x38   : > { %1314 = vmatmul.mubr.msk.bf16.gmra.mrb[8].mxu0 %vm341_vm0, %v1414_v13  ;;  %1322 = vmatmul.mubr.msk.bf16.gmra.mrb[8].mxu1 %vm341_vm0, %v1415_v14 }
  0x39   : > { %452 = vmatprep.mubr.bf16.mxu0 %v1634_v2  ;;  %532 = vmatprep.mubr.bf16.mxu1 %v1634_v2 }
  0x40   : > { %1315 = vmatmul.mubr.msk.bf16.gmra.mrb[12].mxu0 %vm341_vm0, %v1416_v15  ;;  %1323 = vmatmul.mubr.msk.bf16.gmra.mrb[12].mxu1 %vm341_vm0, %v1417_v16 }
  0x41   : > { %462 = vmatprep.mubr.bf16.mxu0 %v1634_v2  ;;  %542 = vmatprep.mubr.bf16.mxu1 %v1634_v2 }
  0x48   : > { %1316 = vmatmul.mubr.msk.bf16.gmra.mrb[16].mxu0 %vm341_vm0, %v1418_v17  ;;  %1324 = vmatmul.mubr.msk.bf16.gmra.mrb[16].mxu1 %vm341_vm0, %v1419_v18 }
  0x49   : > { %472 = vmatprep.mubr.bf16.mxu0 %v1634_v2  ;;  %552 = vmatprep.mubr.bf16.mxu1 %v1634_v2 }
  0x50   : > { %1317 = vmatmul.mubr.msk.bf16.gmra.mrb[20].mxu0 %vm341_vm0, %v1420_v19  ;;  %1325 = vmatmul.mubr.msk.bf16.gmra.mrb[20].mxu1 %vm341_vm0, %v1421_v20 }
  0x51   : > { %482 = vmatprep.mubr.bf16.mxu0 %v1634_v2  ;;  %562 = vmatprep.mubr.bf16.mxu1 %v1634_v2 }
  0x58   : > { %1318 = vmatmul.mubr.msk.bf16.gmra.mrb[24].mxu0 %vm341_vm0, %v1422_v21  ;;  %1326 = vmatmul.mubr.msk.bf16.gmra.mrb[24].mxu1 %vm341_vm0, %v1423_v22 }
  0x59   : > { %492 = vmatprep.mubr.bf16.mxu0 %v1634_v2  ;;  %572 = vmatprep.mubr.bf16.mxu1 %v1634_v2 }
  0x60   : > { %1319 = vmatmul.mubr.msk.bf16.gmra.mrb[28].mxu0 %vm341_vm0, %v1424_v23  ;;  %1327 = vmatmul.mubr.msk.bf16.gmra.mrb[28].mxu1 %vm341_vm0, %v1425_v24 }
  0xfb   : > { %v424_v25 = vpop.f32.mrb[0].mxu0  ;;  %v504_v26 = vpop.f32.mrb[0].mxu1 }
  0xfc   : > { %v583_v27 = vmul.f32 %v424_v25, %v424_v25  ;;  %v599_v28 = vmul.f32 %v504_v26, %v504_v26  ;;  %v426_v29 = vpop.f32.mrb[1].mxu0  ;;  %v506_v30 = vpop.f32.mrb[1].mxu1 }
  0xfd   : > { %v615_v31 = vmul.f32 %v426_v29, %v426_v29  ;;  %v631_v32 = vmul.f32 %v506_v30, %v506_v30  ;;  %v428_v33 = vpop.f32.mrb[2].mxu0  ;;  %v508_v34 = vpop.f32.mrb[2].mxu1 }
  0xfe   : > { %v584_v35 = vmul.f32 %v428_v33, %v428_v33  ;;  %v600_v36 = vmul.f32 %v508_v34, %v508_v34  ;;  %v430_v37 = vpop.f32.mrb[3].mxu0  ;;  %v510_v38 = vpop.f32.mrb[3].mxu1 }
  0xff   : > { %v647_v39 = vadd.f32 %v615_v31, %v583_v27  ;;  %v1785_v40 = vadd.f32 %v631_v32, %v599_v28  ;;  %v616_v41 = vmul.f32 %v430_v37, %v430_v37  ;;  %v632_v42 = vmul.f32 %v510_v38, %v510_v38 }
 0x101   : > { %1426 = vrsqrt.f32 %v647_v39  ;;  %v935_v43 = vmax.f32 %v647_v39, 1e-10  ;;  %v1788_v44 = vadd.f32 %v616_v41, %v584_v35  ;;  %v1790_v45 = vadd.f32 %v632_v42, %v600_v36 }
 0x102   : > { %1428 = vrsqrt.f32 %v1785_v40  ;;  %v999_v48 = vmax.f32 %v1785_v40, 1e-10  ;;  %vm681_vm1 = vcmp.eq.f32.partialorder %v647_v39, inf  ;;  %vm683_vm2 = vcmp.eq.f32.partialorder %v647_v39, 0.0 }
 0x103   : > { %v434_v46 = vpop.f32.mrb[4].mxu0  ;;  %v514_v47 = vpop.f32.mrb[4].mxu1  ;;  %1430 = vlog2.f32 %v935_v43  ;;  %v936_v54 = vmax.f32 %v1788_v44, 1e-10  ;;  %v1000_v60 = vmax.f32 %v1790_v45, 1e-10 }
 0x104   : > { %v436_v49 = vpop.f32.mrb[5].mxu0  ;;  %v516_v50 = vpop.f32.mrb[5].mxu1  ;;  %v585_v51 = vmul.f32 %v434_v46, %v434_v46  ;;  %1432 = vrsqrt.f32 %v1788_v44  ;;  %v601_v55 = vmul.f32 %v514_v47, %v514_v47  ;;  %v684_v8 = vand.u32 2147483648, %v647_v39 }
 0x105   : > { %v438_v52 = vpop.f32.mrb[6].mxu0  ;;  %v518_v53 = vpop.f32.mrb[6].mxu1  ;;  %1434 = vrsqrt.f32 %v1790_v45  ;;  %v617_v58 = vmul.f32 %v436_v49, %v436_v49  ;;  %v633_v59 = vmul.f32 %v516_v50, %v516_v50  ;;  %vm793_vm3 = vcmp.eq.f32.partialorder %v1785_v40, inf }
 0x106   : > { %v440_v56 = vpop.f32.mrb[7].mxu0  ;;  %v520_v57 = vpop.f32.mrb[7].mxu1  ;;  %1436 = vlog2.f32 %v999_v48  ;;  %v586_v62 = vmul.f32 %v438_v52, %v438_v52  ;;  %v602_v0 = vmul.f32 %v518_v53, %v518_v53  ;;  %v796_v12 = vand.u32 2147483648, %v1785_v40 }
 0x107   : > { %1438 = vlog2.f32 %v936_v54  ;;  %v1797_v61 = vadd.f32 %v617_v58, %v585_v51  ;;  %v1799_v63 = vadd.f32 %v633_v59, %v601_v55  ;;  %v618_v1 = vmul.f32 %v440_v56, %v440_v56 }
 0x108   : > { %v634_v2 = vmul.f32 %v520_v57, %v520_v57  ;;  %vm795_vm4 = vcmp.eq.f32.partialorder %v1785_v40, 0.0  ;;  %vm688_vm5 = vcmp.eq.f32.partialorder %v1788_v44, inf  ;;  %vm690_vm6 = vcmp.eq.f32.partialorder %v1788_v44, 0.0 }
 0x109   : > { %1440 = vrsqrt.f32 %v1797_v61  ;;  %v937_v16 = vmax.f32 %v1797_v61, 1e-10  ;;  %v1820_v17 = vadd.f32 %v618_v1, %v586_v62  ;;  %v691_v29 = vand.u32 2147483648, %v1788_v44 }
 0x10a   : > { %1442 = vrsqrt.f32 %v1799_v63  ;;  %v1822_v18 = vadd.f32 %v634_v2, %v602_v0  ;;  %vm800_vm7 = vcmp.eq.f32.partialorder %v1790_v45, inf  ;;  %vm802_vm8 = vcmp.eq.f32.partialorder %v1790_v45, 0.0 }
 0x10b   : > { %v1427_v3 = vpop.eup %1426  ;;  %v1802_v4 = vpop.f32.mrb[8].mxu0  ;;  %1444 = vlog2.f32 %v1000_v60  ;;  %v803_v32 = vand.u32 2147483648, %v1790_v45  ;;  %vm695_vm9 = vcmp.eq.f32.partialorder %v1797_v61, inf  ;;  %v1001_v35 = vmax.f32 %v1799_v63, 1e-10 }
 0x10c   : > { %v1804_v5 = vpop.f32.mrb[8].mxu1  ;;  %v1429_v6 = vpop.eup %1428  ;;  %v680_v7 = vmul.f32 %v1427_v3, %v647_v39  ;;  %1446 = vlog2.f32 %v937_v16  ;;  %vm697_vm10 = vcmp.eq.f32.partialorder %v1797_v61, 0.0  ;;  %v698_v46 = vand.u32 2147483648, %v1797_v61 }
 0x10d   : > { %v1807_v9 = vpop.f32.mrb[9].mxu0  ;;  %v1809_v10 = vpop.f32.mrb[9].mxu1  ;;  %v792_v11 = vmul.f32 %v1429_v6, %v1785_v40  ;;  %1448 = vrsqrt.f32 %v1820_v17  ;;  %vm807_vm11 = vcmp.eq.f32.partialorder %v1799_v63, inf  ;;  %vm809_vm12 = vcmp.eq.f32.partialorder %v1799_v63, 0.0 }
 0x10e   : > { %v1814_v13 = vpop.f32.mrb[10].mxu0  ;;  %v1816_v14 = vpop.f32.mrb[10].mxu1  ;;  %v682_v15 = vsel %vm681_vm1, %v647_v39, %v680_v7  ;;  %1450 = vrsqrt.f32 %v1822_v18  ;;  %v587_v56 = vmul.f32 %v1802_v4, %v1802_v4  ;;  %v603_v57 = vmul.f32 %v1804_v5, %v1804_v5 }
 0x10f   : > { %v1824_v19 = vpop.f32.mrb[11].mxu0  ;;  %v1826_v20 = vpop.f32.mrb[11].mxu1  ;;  %v1829_v22 = vsel %vm683_vm2, %v684_v8, %v682_v15  ;;  %v794_v23 = vsel %vm793_vm3, %v1785_v40, %v792_v11  ;;  %1452 = vlog2.f32 %v1001_v35  ;;  %v938_v59 = vmax.f32 %v1820_v17, 1e-10 }
 0x110   : > { %v1431_v21 = vpop.eup %1430  ;;  %v1833_v25 = vsel %vm795_vm4, %v796_v12, %v794_v23  ;;  %v619_v60 = vmul.f32 %v1807_v9, %v1807_v9  ;;  %v635_v62 = vmul.f32 %v1809_v10, %v1809_v10  ;;  %v1002_v3 = vmax.f32 %v1822_v18, 1e-10 }
 0x111   : > { %v1433_v24 = vpop.eup %1432  ;;  %v903_v27 = vsub.f32 %v1829_v22, %v1833_v25  ;;  %v952_v49 = vmul.f32 0.6931472, %v1431_v21  ;;  %vm702_vm13 = vcmp.eq.f32.partialorder %v1820_v17, inf  ;;  %1454 = vlog2.f32 %v938_v59 }
 0x112   : > { %v1435_v26 = vpop.eup %1434  ;;  %v687_v28 = vmul.f32 %v1433_v24, %v1788_v44  ;;  %v1906_v6 = vadd.f32 %v619_v60, %v587_v56  ;;  %v1908_v7 = vadd.f32 %v635_v62, %v603_v57  ;;  %1456 = vlog2.f32 %v1002_v3 }
 0x113   : > { %v1437_v30 = vpop.eup %1436  ;;  %v799_v31 = vmul.f32 %v1435_v26, %v1790_v45  ;;  %v1849_v36 = vpop.f32.mrb[12].mxu0  ;;  %v1921_v16 = vmul.f32 0.4342945, %v952_v49  ;;  %v705_v35 = vand.u32 2147483648, %v1820_v17  ;;  %vm814_vm14 = vcmp.eq.f32.partialorder %v1822_v18, inf }
 0x114   : > { %v1439_v33 = vpop.eup %1438  ;;  %v689_v34 = vsel %vm688_vm5, %v1788_v44, %v687_v28  ;;  %v1851_v37 = vpop.f32.mrb[12].mxu1  ;;  %v1016_v0 = vmul.f32 0.6931472, %v1437_v30  ;;  %v1932_v28 = vand.u32 2147483647, %v903_v27  ;;  %v588_v30 = vmul.f32 %v1814_v13, %v1814_v13 }
 0x115   : > { %v1855_v38 = vsel %vm690_vm6, %v691_v29, %v689_v34  ;;  %v801_v39 = vsel %vm800_vm7, %v1790_v45, %v799_v31  ;;  %v1860_v40 = vpop.f32.mrb[13].mxu0  ;;  %v1862_v41 = vpop.f32.mrb[13].mxu1  ;;  %v810_v45 = vand.u32 2147483648, %v1799_v63  ;;  %v954_v4 = vmul.f32 0.6931472, %v1439_v33 }
 0x116   : > { %v1441_v42 = vpop.eup %1440  ;;  %v1866_v43 = vsel %vm802_vm8, %v803_v32, %v801_v39  ;;  %v1871_v44 = vpop.f32.mrb[14].mxu0  ;;  %v1923_v21 = vmul.f32 0.4342945, %v1016_v0  ;;  %2524 = vst [vmem:[#allocation6_spill] sm:$0xff] %v1932_v28  ;;  %vm704_vm15 = vcmp.eq.f32.partialorder %v1820_v17, 0.0  ;;  %v604_v25 = vmul.f32 %v1816_v14, %v1816_v14 }
 0x117   : > { %v1873_v47 = vpop.f32.mrb[14].mxu1  ;;  %v1443_v48 = vpop.eup %1442  ;;  %v904_v50 = vsub.f32 %v1855_v38, %v1866_v43  ;;  %v694_v51 = vmul.f32 %v1441_v42, %v1797_v61  ;;  %v1934_v29 = vmul.f32 0.4342945, %v954_v4  ;;  %v620_v13 = vmul.f32 %v1824_v19, %v1824_v19 }
 0x118   : > { %v460_v52 = vpop.f32.mrb[15].mxu0  ;;  %v1879_v53 = vpop.f32.mrb[15].mxu1  ;;  %v806_v55 = vmul.f32 %v1443_v48, %v1799_v63  ;;  %v636_v27 = vmul.f32 %v1826_v20, %v1826_v20  ;;  %1458 = vrsqrt.f32 %v1906_v6  ;;  %v1003_v48 = vmax.f32 %v1908_v7, 1e-10 }
 0x119   : > { %v1445_v54 = vpop.eup %1444  ;;  %v696_v58 = vsel %vm695_vm9, %v1797_v61, %v694_v51  ;;  %v1958_v49 = vadd.f32 %v620_v13, %v588_v30  ;;  %v589_v14 = vmul.f32 %v1849_v36, %v1849_v36  ;;  %v621_v19 = vmul.f32 %v1860_v40, %v1860_v40 }
 0x11a   : > { %v1896_v1 = vsel %vm697_vm10, %v698_v46, %v696_v58  ;;  %v808_v2 = vsel %vm807_vm11, %v1799_v63, %v806_v55  ;;  %v1018_v8 = vmul.f32 0.6931472, %v1445_v54  ;;  %v1447_v11 = vpop.eup %1446  ;;  %v939_v46 = vmax.f32 %v1906_v6, 1e-10 }
 0x11b   : > { %v1904_v5 = vsel %vm809_vm12, %v810_v45, %v808_v2  ;;  %v1912_v9 = vpop.f32.mrb[16].mxu0  ;;  %v1914_v10 = vpop.f32.mrb[16].mxu1  ;;  %v956_v34 = vmul.f32 0.6931472, %v1447_v11  ;;  %v1960_v51 = vadd.f32 %v636_v27, %v604_v25  ;;  %v605_v20 = vmul.f32 %v1851_v37, %v1851_v37 }
 0x11c   : > { %v1917_v12 = vpop.f32.mrb[17].mxu0  ;;  %v1919_v63 = vpop.f32.mrb[17].mxu1  ;;  %v1942_v33 = vmul.f32 0.4342945, %v1018_v8  ;;  %v637_v45 = vmul.f32 %v1862_v41, %v1862_v41  ;;  %v590_v54 = vmul.f32 %v1871_v44, %v1871_v44  ;;  %v622_v55 = vmul.f32 %v460_v52, %v460_v52 }
 0x11d   : > { %v1449_v15 = vpop.eup %1448  ;;  %v1925_v23 = vpop.f32.mrb[18].mxu0  ;;  %vm816_vm0 = vcmp.eq.f32.partialorder %v1822_v18, 0.0  ;;  %v817_v36 = vand.u32 2147483648, %v1822_v18  ;;  %1460 = vrsqrt.f32 %v1908_v7  ;;  %v1984_v41 = vand.u32 2147483647, %v904_v50 }
 0x11e   : > { %v1927_v24 = vpop.f32.mrb[18].mxu1  ;;  %v1451_v26 = vpop.eup %1450  ;;  %v701_v22 = vmul.f32 %v1449_v15, %v1820_v17  ;;  %v1986_v44 = vmul.f32 0.4342945, %v956_v34  ;;  %1462 = vlog2.f32 %v939_v46  ;;  %v940_v38 = vmax.f32 %v1958_v49, 1e-10 }
 0x11f   : > { %v1938_v31 = vpop.f32.mrb[19].mxu0  ;;  %v1940_v32 = vpop.f32.mrb[19].mxu1  ;;  %v813_v42 = vmul.f32 %v1451_v26, %v1822_v18  ;;  %2525 = vst [vmem:[#allocation7_spill] sm:$0xff] %v1984_v41  ;;  %1464 = vlog2.f32 %v1003_v48  ;;  %v1999_v43 = vadd.f32 %v621_v19, %v589_v14  ;;  %v2005_v4 = vadd.f32 %v637_v45, %v605_v20 }
 0x120   : > { %v1453_v39 = vpop.eup %1452  ;;  %v703_v52 = vsel %vm702_vm13, %v1820_v17, %v701_v22  ;;  %v606_v8 = vmul.f32 %v1873_v47, %v1873_v47  ;;  %v2009_v11 = vadd.f32 %v622_v55, %v590_v54  ;;  %v638_v15 = vmul.f32 %v1879_v53, %v1879_v53 }
 0x121   : > { %v1020_v58 = vmul.f32 0.6931472, %v1453_v39  ;;  %v1455_v62 = vpop.eup %1454  ;;  %v815_v0 = vsel %vm814_vm14, %v1822_v18, %v813_v42  ;;  %1466 = vrsqrt.f32 %v1958_v49  ;;  %v1004_v34 = vmax.f32 %v1960_v51, 1e-10 }
 0x122   : > { %v1457_v3 = vpop.eup %1456  ;;  %v2020_v22 = vsel %vm704_vm15, %v705_v35, %v703_v52  ;;  %v2022_v25 = vmul.f32 0.6931472, %v1455_v62  ;;  %1468 = vrsqrt.f32 %v1960_v51  ;;  %v2028_v53 = vsel %vm816_vm0, %v817_v36, %v815_v0 }
 0x123   : > { %v474_v56 = vpop.f32.mrb[20].mxu0  ;;  %v1972_v57 = vpop.f32.mrb[20].mxu1  ;;  %v2013_v26 = vmul.f32 0.4342945, %v1020_v58  ;;  %v2030_v13 = vmul.f32 0.6931472, %v1457_v3  ;;  %1470 = vlog2.f32 %v940_v38  ;;  %v2034_v35 = vadd.f32 %v638_v15, %v606_v8 }
 0x124   : > { %v1977_v40 = vpop.f32.mrb[21].mxu0  ;;  %v1979_v37 = vpop.f32.mrb[21].mxu1  ;;  %v941_v17 = vmax.f32 %v1999_v43, 1e-10  ;;  %v591_v42 = vmul.f32 %v1912_v9, %v1912_v9  ;;  %v607_v46 = vmul.f32 %v1914_v10, %v1914_v10  ;;  %1472 = vlog2.f32 %v1004_v34 }
 0x125   : > { %v1991_v59 = vpop.f32.mrb[22].mxu0  ;;  %v1993_v60 = vpop.f32.mrb[22].mxu1  ;;  %2526 = vst [vmem:[#allocation8_spill] sm:$0xff] %v2030_v13  ;;  %v623_v14 = vmul.f32 %v1917_v12, %v1917_v12  ;;  %v639_v19 = vmul.f32 %v1919_v63, %v1919_v63  ;;  %v592_v20 = vmul.f32 %v1925_v23, %v1925_v23  ;;  %1474 = vrsqrt.f32 %v1999_v43 }
 0x126   : > { %v2001_v50 = vpop.f32.mrb[23].mxu0  ;;  %v2003_v2 = vpop.f32.mrb[23].mxu1  ;;  %v608_v9 = vmul.f32 %v1927_v24, %v1927_v24  ;;  %v624_v10 = vmul.f32 %v1938_v31, %v1938_v31  ;;  %v640_v55 = vmul.f32 %v1940_v32, %v1940_v32  ;;  %vm709_vm1 = vcmp.eq.f32.partialorder %v1906_v6, inf }
 0x127   : > { %v1459_v39 = vpop.eup %1458  ;;  %1476 = vrsqrt.f32 %v2005_v4  ;;  %v2055_v63 = vadd.f32 %v623_v14, %v591_v42  ;;  %v2057_v23 = vadd.f32 %v639_v19, %v607_v46  ;;  %v593_v52 = vmul.f32 %v474_v56, %v474_v56 }
 0x128   : > { %v1461_v36 = vpop.eup %1460  ;;  %1478 = vlog2.f32 %v941_v17  ;;  %v2061_v31 = vadd.f32 %v624_v10, %v592_v20  ;;  %v2063_v32 = vadd.f32 %v640_v55, %v608_v9  ;;  %v609_v38 = vmul.f32 %v1972_v57, %v1972_v57 }
 0x129   : > { %2527 = vst [vmem:[#allocation9_spill] sm:$0xff] %v2057_v23  ;;  %v2059_v0 = vpop.eup %1462  ;;  %v1005_v8 = vmax.f32 %v2005_v4, 1e-10  ;;  %1480 = vrsqrt.f32 %v2009_v11  ;;  %v625_v56 = vmul.f32 %v1977_v40, %v1977_v40  ;;  %v641_v15 = vmul.f32 %v1979_v37, %v1979_v37 }
 0x12a   : > { %2528 = vst [vmem:[#allocation10_spill] sm:$0xff] %v2063_v32  ;;  %v2067_v3 = vpop.eup %1464  ;;  %1482 = vrsqrt.f32 %v2034_v35  ;;  %v594_v17 = vmul.f32 %v1991_v59, %v1991_v59  ;;  %v610_v57 = vmul.f32 %v1993_v60, %v1993_v60  ;;  %v708_v46 = vmul.f32 %v1459_v39, %v1906_v6 }
 0x12b   : > { %v484_v48 = vpop.f32.mrb[24].mxu0  ;;  %v564_v18 = vpop.f32.mrb[24].mxu1  ;;  %2529 = vst [vmem:[#allocation11_spill] sm:$0xff] %v2067_v3  ;;  %1484 = vrsqrt.f32 %v2055_v63  ;;  %v2083_v14 = vadd.f32 %v625_v56, %v593_v52  ;;  %v2085_v40 = vadd.f32 %v641_v15, %v609_v38  ;;  %vm821_vm2 = vcmp.eq.f32.partialorder %v1908_v7, inf }
 0x12c   : > { %v486_v45 = vpop.f32.mrb[25].mxu0  ;;  %v566_v54 = vpop.f32.mrb[25].mxu1  ;;  %1486 = vrsqrt.f32 %v2061_v31  ;;  %v626_v59 = vmul.f32 %v2001_v50, %v2001_v50  ;;  %v642_v60 = vmul.f32 %v2003_v2, %v2003_v2  ;;  %v595_v19 = vmul.f32 %v484_v48, %v484_v48 }
 0x12d   : > { %v488_v12 = vpop.f32.mrb[26].mxu0  ;;  %v568_v58 = vpop.f32.mrb[26].mxu1  ;;  %v820_v10 = vmul.f32 %v1461_v36, %v1908_v7  ;;  %1488 = vlog2.f32 %v1005_v8  ;;  %v611_v55 = vmul.f32 %v564_v18, %v564_v18  ;;  %v627_v52 = vmul.f32 %v486_v45, %v486_v45 }
 0x12e   : > { %v490_v62 = vpop.f32.mrb[27].mxu0  ;;  %v570_v24 = vpop.f32.mrb[27].mxu1  ;;  %vm716_vm3 = vcmp.eq.f32.partialorder %v1958_v49, inf  ;;  %1490 = vrsqrt.f32 %v2083_v14  ;;  %v2099_v50 = vadd.f32 %v626_v59, %v594_v17  ;;  %v2101_v2 = vadd.f32 %v642_v60, %v610_v57 }
 0x12f   : > { %v1467_v42 = vpop.eup %1466  ;;  %vm828_vm4 = vcmp.eq.f32.partialorder %v1960_v51, inf  ;;  %v2106_v18 = vadd.f32 %v627_v52, %v595_v19  ;;  %v643_v45 = vmul.f32 %v566_v54, %v566_v54  ;;  %v596_v36 = vmul.f32 %v488_v12, %v488_v12 }
 0x130   : > { %v1469_v37 = vpop.eup %1468  ;;  %v612_v8 = vmul.f32 %v568_v58, %v568_v58  ;;  %v710_v17 = vsel %vm709_vm1, %v1906_v6, %v708_v46  ;;  %vm711_vm5 = vcmp.eq.f32.partialorder %v1906_v6, 0.0  ;;  %1492 = vrsqrt.f32 %v2099_v50 }
 0x131   : > { %v2093_v9 = vpop.eup %1470  ;;  %v628_v57 = vmul.f32 %v490_v62, %v490_v62  ;;  %v644_v59 = vmul.f32 %v570_v24, %v570_v24  ;;  %v715_v19 = vmul.f32 %v1467_v42, %v1958_v49  ;;  %vm718_vm6 = vcmp.eq.f32.partialorder %v1958_v49, 0.0 }
 0x132   : > { %v2103_v34 = vpop.eup %1472  ;;  %vm723_vm7 = vcmp.eq.f32.partialorder %v1999_v43, inf  ;;  %v2116_v54 = vadd.f32 %v643_v45, %v611_v55  ;;  %v827_v46 = vmul.f32 %v1469_v37, %v1960_v51  ;;  %1494 = vrsqrt.f32 %v2106_v18 }
 0x133   : > { %v494_v20 = vpop.f32.mrb[28].mxu0  ;;  %v574_v39 = vpop.f32.mrb[28].mxu1  ;;  %2530 = vst [vmem:[#allocation12_spill] sm:$0xff] %v2103_v34  ;;  %v2122_v30 = vadd.f32 %v628_v57, %v596_v36  ;;  %v2124_v62 = vadd.f32 %v644_v59, %v612_v8  ;;  %1496 = vrsqrt.f32 %v2057_v23  ;;  %v2131_v37 = vsel %vm821_vm2, %v1908_v7, %v820_v10 }
 0x134   : > { %v496_v38 = vpop.f32.mrb[29].mxu0  ;;  %v576_v56 = vpop.f32.mrb[29].mxu1  ;;  %v597_v12 = vmul.f32 %v494_v20, %v494_v20  ;;  %v613_v58 = vmul.f32 %v574_v39, %v574_v39  ;;  %v717_v10 = vsel %vm716_vm3, %v1958_v49, %v715_v19  ;;  %vm725_vm8 = vcmp.eq.f32.partialorder %v1999_v43, 0.0 }
 0x135   : > { %v498_v48 = vpop.f32.mrb[30].mxu0  ;;  %v578_v61 = vpop.f32.mrb[30].mxu1  ;;  %v629_v42 = vmul.f32 %v496_v38, %v496_v38  ;;  %v645_v41 = vmul.f32 %v576_v56, %v576_v56  ;;  %1498 = vrsqrt.f32 %v2122_v30  ;;  %vm730_vm9 = vcmp.eq.f32.partialorder %v2009_v11, inf }
 0x136   : > { %v500_v47 = vpop.f32.mrb[31].mxu0  ;;  %v580_v27 = vpop.f32.mrb[31].mxu1  ;;  %v598_v28 = vmul.f32 %v498_v48, %v498_v48  ;;  %v614_v20 = vmul.f32 %v578_v61, %v578_v61  ;;  %1500 = vrsqrt.f32 %v2063_v32  ;;  %vm835_vm10 = vcmp.eq.f32.partialorder %v2005_v4, inf }
 0x137   : > { %v1475_v15 = vpop.eup %1474  ;;  %v630_v39 = vmul.f32 %v500_v47, %v500_v47  ;;  %v646_v45 = vmul.f32 %v580_v27, %v580_v27  ;;  %v2134_v36 = vadd.f32 %v629_v42, %v597_v12  ;;  %v2136_v8 = vadd.f32 %v645_v41, %v613_v58 }
 0x138   : > { %v1477_v60 = vpop.eup %1476  ;;  %v722_v56 = vmul.f32 %v1475_v15, %v1999_v43  ;;  %1502 = vrsqrt.f32 %v2085_v40  ;;  %v2532_v12 = vand.u32 2147483648, %v1906_v6  ;;  %vm732_vm11 = vcmp.eq.f32.partialorder %v2009_v11, 0.0 }
 0x139   : > { %v2118_v52 = vpop.eup %1478  ;;  %v2140_v61 = vadd.f32 %v630_v39, %v598_v28  ;;  %v2142_v47 = vadd.f32 %v646_v45, %v614_v20  ;;  %1504 = vrsqrt.f32 %v2101_v2  ;;  %v2155_v28 = vsel %vm828_vm4, %v1960_v51, %v827_v46 }
 0x13a   : > { %v1481_v24 = vpop.eup %1480  ;;  %v2158_v15 = vmul.f32 %v1477_v60, %v2005_v4  ;;  %1506 = vrsqrt.f32 %v2116_v54  ;;  %v2170_v58 = vsel %vm711_vm5, %v2532_v12, %v710_v17  ;;  %v2533_v60 = vand.u32 2147483648, %v1958_v49 }
 0x13b   : > { %v1483_v55 = vpop.eup %1482  ;;  %v729_v41 = vmul.f32 %v1481_v24, %v2009_v11  ;;  %1508 = vrsqrt.f32 %v2124_v62  ;;  %vm737_vm12 = vcmp.eq.f32.partialorder %v2055_v63, inf  ;;  %vm744_vm13 = vcmp.eq.f32.partialorder %v2061_v31, inf }
 0x13c   : > { %v1485_v13 = vpop.eup %1484  ;;  %v2163_v19 = vmul.f32 %v1483_v55, %v2034_v35  ;;  %v2177_v42 = vsel %vm718_vm6, %v2533_v60, %v717_v10  ;;  %v733_v17 = vand.u32 2147483648, %v2009_v11  ;;  %vm823_vm14 = vcmp.eq.f32.partialorder %v1908_v7, 0.0 }
 0x13d   : > { %v1487_v38 = vpop.eup %1486  ;;  %v736_v59 = vmul.f32 %v1485_v13, %v2055_v63  ;;  %v724_v13 = vsel %vm723_vm7, %v1999_v43, %v722_v56  ;;  %v731_v6 = vsel %vm730_vm9, %v2009_v11, %v729_v41  ;;  %v740_v10 = vand.u32 2147483648, %v2055_v63 }
 0x13e   : > { %v2144_v27 = vpop.eup %1488  ;;  %v743_v46 = vmul.f32 %v1487_v38, %v2061_v31  ;;  %v2534_v38 = vand.u32 2147483648, %v1999_v43  ;;  %v747_v41 = vand.u32 2147483648, %v2061_v31  ;;  %vm830_vm15 = vcmp.eq.f32.partialorder %v1960_v51, 0.0 }
 0x13f   : > { %2531 = vst [vmem:[#allocation13_spill] sm:$0xff] %v2144_v27  ;;  %v1491_v57 = vpop.eup %1490  ;;  %v738_v55 = vsel %vm737_vm12, %v2055_v63, %v736_v59  ;;  %v2204_v59 = vsel %vm732_vm11, %v733_v17, %v731_v6  ;;  %vm739_vm0 = vcmp.eq.f32.partialorder %v2055_v63, 0.0  ;;  %vm746_vm1 = vcmp.eq.f32.partialorder %v2061_v31, 0.0 }
 0x140   : > { %v1493_v24 = vpop.eup %1492  ;;  %v745_v20 = vsel %vm744_vm13, %v2061_v31, %v743_v46  ;;  %v750_v39 = vmul.f32 %v1491_v57, %v2083_v14  ;;  %v2196_v56 = vsel %vm725_vm8, %v2534_v38, %v724_v13  ;;  %v2209_v46 = vsel %vm739_vm0, %v740_v10, %v738_v55 }
 0x141   : > { %v1495_v49 = vpop.eup %1494  ;;  %v757_v12 = vmul.f32 %v1493_v24, %v2099_v50  ;;  %v2211_v13 = vsel %vm746_vm1, %v747_v41, %v745_v20  ;;  %vm751_vm2 = vcmp.eq.f32.partialorder %v2083_v14, inf  ;;  %vm753_vm3 = vcmp.eq.f32.partialorder %v2083_v14, 0.0 }
 0x142   : > { %v1497_v45 = vpop.eup %1496  ;;  %v764_v43 = vmul.f32 %v1495_v49, %v2106_v18  ;;  %v752_v48 = vsel %vm751_vm2, %v2083_v14, %v750_v39  ;;  %v754_v6 = vand.u32 2147483648, %v2083_v14  ;;  %vm758_vm4 = vcmp.eq.f32.partialorder %v2099_v50, inf }
 0x143   : > { %v1499_v60 = vpop.eup %1498  ;;  %v759_v49 = vsel %vm758_vm4, %v2099_v50, %v757_v12  ;;  %vm765_vm5 = vcmp.eq.f32.partialorder %v2106_v18, inf  ;;  %vm772_vm6 = vcmp.eq.f32.partialorder %v2122_v30, inf  ;;  %1510 = vrsqrt.f32 %v2134_v36 }
 0x144   : > { %v1501_v57 = vpop.eup %1500  ;;  %v771_v24 = vmul.f32 %v1499_v60, %v2122_v30  ;;  %v761_v20 = vand.u32 2147483648, %v2099_v50  ;;  %v766_v39 = vsel %vm765_vm5, %v2106_v18, %v764_v43  ;;  %1512 = vrsqrt.f32 %v2140_v61 }
 0x145   : > { %v1503_v38 = vpop.eup %1502  ;;  %v2227_v60 = vsel %vm753_vm3, %v754_v6, %v752_v48  ;;  %vm760_vm7 = vcmp.eq.f32.partialorder %v2099_v50, 0.0  ;;  %v768_v12 = vand.u32 2147483648, %v2106_v18  ;;  %v775_v27 = vand.u32 2147483648, %v2122_v30 }
 0x146   : > { %v1505_v17 = vpop.eup %1504  ;;  %v773_v10 = vsel %vm772_vm6, %v2122_v30, %v771_v24  ;;  %v2232_v34 = vsel %vm760_vm7, %v761_v20, %v759_v49  ;;  %vm767_vm8 = vcmp.eq.f32.partialorder %v2106_v18, 0.0  ;;  %vm774_vm9 = vcmp.eq.f32.partialorder %v2122_v30, 0.0 }
 0x147   : > { %v1507_v55 = vpop.eup %1506  ;;  %v836_v43 = vsel %vm835_vm10, %v2005_v4, %v2158_v15  ;;  %v2240_v24 = vsel %vm767_vm8, %v768_v12, %v766_v39  ;;  %v2242_v48 = vsel %vm774_vm9, %v775_v27, %v773_v10  ;;  %v2535_v49 = vand.u32 2147483648, %v1908_v7 }
 0x148   : > { %v1509_v41 = vpop.eup %1508  ;;  %vm837_vm11 = vcmp.eq.f32.partialorder %v2005_v4, 0.0  ;;  %vm842_vm12 = vcmp.eq.f32.partialorder %v2034_v35, inf  ;;  %v848_v15 = vmul.f32 %v1497_v45, %v2057_v23  ;;  %v2536_v27 = vand.u32 2147483648, %v1960_v51 }
 0x149   : > { %v2251_v20 = vsel %vm823_vm14, %v2535_v49, %v2131_v37  ;;  %v2537_v10 = vand.u32 2147483648, %v2005_v4  ;;  %v843_v7 = vsel %vm842_vm12, %v2034_v35, %v2163_v19  ;;  %v855_v37 = vmul.f32 %v1501_v57, %v2063_v32 }
 0x14a   : > { %v2261_v39 = vsel %vm830_vm15, %v2536_v27, %v2155_v28  ;;  %vm779_vm10 = vcmp.eq.f32.partialorder %v2134_v36, inf  ;;  %vm844_vm13 = vcmp.eq.f32.partialorder %v2034_v35, 0.0  ;;  %vm849_vm14 = vcmp.eq.f32.partialorder %v2057_v23, inf }
 0x14b   : > { %v2265_v12 = vsel %vm837_vm11, %v2537_v10, %v836_v43  ;;  %vm856_vm0 = vcmp.eq.f32.partialorder %v2063_v32, inf  ;;  %v862_v51 = vmul.f32 %v1503_v38, %v2085_v40  ;;  %vm786_vm15 = vcmp.eq.f32.partialorder %v2140_v61, inf }
 0x14c   : > { %v845_v4 = vand.u32 2147483648, %v2034_v35  ;;  %v850_v28 = vsel %vm849_vm14, %v2057_v23, %v848_v15  ;;  %v857_v19 = vsel %vm856_vm0, %v2063_v32, %v855_v37  ;;  %vm863_vm1 = vcmp.eq.f32.partialorder %v2085_v40, inf }
 0x14d   : > { %v852_v45 = vand.u32 2147483648, %v2057_v23  ;;  %v859_v57 = vand.u32 2147483648, %v2063_v32  ;;  %v864_v43 = vsel %vm863_vm1, %v2085_v40, %v862_v51  ;;  %v869_v49 = vmul.f32 %v1505_v17, %v2101_v2  ;;  %v1511_v27 = vpop.eup %1510 }
 0x14e   : > { %vm851_vm2 = vcmp.eq.f32.partialorder %v2057_v23, 0.0  ;;  %vm858_vm3 = vcmp.eq.f32.partialorder %v2063_v32, 0.0  ;;  %v866_v38 = vand.u32 2147483648, %v2085_v40  ;;  %v876_v15 = vmul.f32 %v1507_v55, %v2116_v54  ;;  %v1513_v10 = vpop.eup %1512 }
 0x14f   : > { %v846_v37 = vsel %vm844_vm13, %v845_v4, %v843_v7  ;;  %v853_v3 = vsel %vm851_vm2, %v852_v45, %v850_v28  ;;  %v860_v6 = vsel %vm858_vm3, %v859_v57, %v857_v19  ;;  %vm865_vm4 = vcmp.eq.f32.partialorder %v2085_v40, 0.0 }
 0x150   : > { %v778_v51 = vmul.f32 %v1511_v27, %v2134_v36  ;;  %v867_v17 = vsel %vm865_vm4, %v866_v38, %v864_v43  ;;  %vm870_vm5 = vcmp.eq.f32.partialorder %v2101_v2, inf  ;;  %vm872_vm6 = vcmp.eq.f32.partialorder %v2101_v2, 0.0 }
 0x151   : > { %v785_v32 = vmul.f32 %v1513_v10, %v2140_v61  ;;  %v871_v23 = vsel %vm870_vm5, %v2101_v2, %v869_v49  ;;  %vm877_vm7 = vcmp.eq.f32.partialorder %v2116_v54, inf  ;;  %v883_v55 = vmul.f32 %v1509_v41, %v2124_v62 }
 0x152   : > { %v873_v7 = vand.u32 2147483648, %v2101_v2  ;;  %v878_v4 = vsel %vm877_vm7, %v2116_v54, %v876_v15  ;;  %vm879_vm8 = vcmp.eq.f32.partialorder %v2116_v54, 0.0  ;;  %vm884_vm9 = vcmp.eq.f32.partialorder %v2124_v62, inf }
 0x153   : > { %vm781_vm11 = vcmp.eq.f32.partialorder %v2134_v36, 0.0  ;;  %v880_v28 = vand.u32 2147483648, %v2116_v54  ;;  %v885_v19 = vsel %vm884_vm9, %v2124_v62, %v883_v55  ;;  %v887_v45 = vand.u32 2147483648, %v2124_v62 }
 0x154   : > { %1514 = vrsqrt.f32 %v2136_v8  ;;  %v780_v41 = vsel %vm779_vm10, %v2134_v36, %v778_v51  ;;  %vm788_vm12 = vcmp.eq.f32.partialorder %v2140_v61, 0.0  ;;  %v874_v57 = vsel %vm872_vm6, %v873_v7, %v871_v23 }
 0x155   : > { %vm886_vm13 = vcmp.eq.f32.partialorder %v2124_v62, 0.0  ;;  %1516 = vrsqrt.f32 %v2142_v47  ;;  %v787_v43 = vsel %vm786_vm15, %v2140_v61, %v785_v32  ;;  %v881_v49 = vsel %vm879_vm8, %v880_v28, %v878_v4 }
 0x156   : > { %v888_v27 = vsel %vm886_vm13, %v887_v45, %v885_v19  ;;  %v906_v38 = vsub.f32 %v2020_v22, %v2028_v53  ;;  %v907_v15 = vsub.f32 %v2170_v58, %v2251_v20  ;;  %v908_v10 = vsub.f32 %v2177_v42, %v2261_v39 }
 0x157   : > { %v909_v23 = vsub.f32 %v2196_v56, %v2265_v12  ;;  %v910_v51 = vsub.f32 %v2204_v59, %v846_v37  ;;  %v911_v55 = vsub.f32 %v2209_v46, %v853_v3  ;;  %v912_v32 = vsub.f32 %v2211_v13, %v860_v6 }
 0x158   : > { %v913_v7 = vsub.f32 %v2227_v60, %v867_v17  ;;  %v914_v4 = vsub.f32 %v2232_v34, %v874_v57  ;;  %vm891_vm10 = vcmp.eq.f32.partialorder %v2136_v8, inf  ;;  %vm893_vm14 = vcmp.eq.f32.partialorder %v2136_v8, 0.0 }
 0x159   : > { %v915_v22 = vsub.f32 %v2240_v24, %v881_v49  ;;  %v916_v53 = vsub.f32 %v2242_v48, %v888_v27  ;;  %v894_v58 = vand.u32 2147483648, %v2136_v8  ;;  %vm898_vm0 = vcmp.eq.f32.partialorder %v2142_v47, inf }
 0x15a   : > { %vm900_vm15 = vcmp.eq.f32.partialorder %v2142_v47, 0.0  ;;  %v1063_v3 = vsub.f32 %v1921_v16, %v1923_v21  ;;  %v901_v42 = vand.u32 2147483648, %v2142_v47  ;;  %v2538_v34 = vsub.f32 %v1896_v1, %v1904_v5 }
 0x15b   : > { %v2346_v59 = vand.u32 2147483647, %v906_v38  ;;  %v1064_v46 = vsub.f32 %v1934_v29, %v1942_v33  ;;  %v2350_v13 = vand.u32 2147483647, %v907_v15  ;;  %v2352_v60 = vand.u32 2147483647, %v908_v10 }
 0x15c   : > { %v2344_v56 = vand.u32 2147483647, %v2538_v34  ;;  %v2354_v24 = vand.u32 2147483647, %v909_v23  ;;  %v1065_v48 = vsub.f32 %v1986_v44, %v2013_v26  ;;  %v2539_v6 = vand.u32 2147483648, %v2134_v36  ;;  %v2541_v34 = vld [vmem:[#allocation9_spill] sm:$0xff] }
 0x15d   : > { %v2364_v5 = vand.u32 2147483647, %v910_v51  ;;  %v2366_v20 = vand.u32 2147483647, %v911_v55  ;;  %v942_v39 = vmax.f32 %v2009_v11, 1e-10 }
 0x15e   : > { %v2362_v1 = vsel %vm781_vm11, %v2539_v6, %v780_v41  ;;  %v1515_v12 = vpop.eup %1514  ;;  %v2540_v37 = vand.u32 2147483648, %v2140_v61  ;;  %v2375_v28 = vand.u32 2147483647, %v912_v32  ;;  %v2377_v19 = vand.u32 2147483647, %v913_v7  ;;  %v2547_v29 = vld [vmem:[#allocation6_spill] sm:$0xff] }
 0x15f   : > { %v943_v45 = vmax.f32 %v2055_v63, 1e-10  ;;  %v1517_v41 = vpop.eup %1516  ;;  %v890_v57 = vmul.f32 %v1515_v12, %v2136_v8  ;;  %v2381_v49 = vand.u32 2147483647, %v914_v4  ;;  %v2383_v27 = vand.u32 2147483647, %v915_v22 }
 0x160   : > { %v2373_v17 = vsel %vm788_vm12, %v2540_v37, %v787_v43  ;;  %v944_v11 = vmax.f32 %v2061_v31, 1e-10  ;;  %v897_v38 = vmul.f32 %v1517_v41, %v2142_v47  ;;  %v945_v43 = vmax.f32 %v2083_v14, 1e-10  ;;  %v2548_v26 = vld [vmem:[#allocation7_spill] sm:$0xff] }
 0x161   : > { %v946_v15 = vmax.f32 %v2099_v50, 1e-10  ;;  %v947_v10 = vmax.f32 %v2106_v18, 1e-10  ;;  %v892_v63 = vsel %vm891_vm10, %v2136_v8, %v890_v57  ;;  %v960_v23 = vmul.f32 0.6931472, %v2059_v0 }
 0x162   : > { %v962_v51 = vmul.f32 0.6931472, %v2093_v9  ;;  %1518 = vlog2.f32 %v942_v39  ;;  %v2397_v31 = vsel %vm893_vm14, %v894_v58, %v892_v63  ;;  %v899_v14 = vsel %vm898_vm0, %v2142_v47, %v897_v38  ;;  %v2542_v39 = vld [vmem:[#allocation10_spill] sm:$0xff]  ;;  %v2545_v57 = vld [vmem:[#allocation13_spill] sm:$0xff] }
 0x163   : > { %v964_v50 = vmul.f32 0.6931472, %v2118_v52  ;;  %1520 = vlog2.f32 %v943_v45  ;;  %v2405_v18 = vsel %vm900_vm15, %v901_v42, %v899_v14  ;;  %v917_v0 = vsub.f32 %v2362_v1, %v2397_v31  ;;  %v2544_v45 = vld [vmem:[#allocation12_spill] sm:$0xff] }
 0x164   : > { %v948_v9 = vmax.f32 %v2122_v30, 1e-10  ;;  %1522 = vlog2.f32 %v944_v11  ;;  %v918_v55 = vsub.f32 %v2373_v17, %v2405_v18  ;;  %v2412_v32 = vand.u32 2147483647, %v916_v53 }
 0x165   : > { %v949_v7 = vmax.f32 %v2134_v36, 1e-10  ;;  %1524 = vlog2.f32 %v945_v43  ;;  %v950_v52 = vmax.f32 %v2140_v61, 1e-10  ;;  %v986_v4 = vmul.f32 0.4342945, %v2022_v25 }
 0x166   : > { %1526 = vlog2.f32 %v946_v15  ;;  %v987_v22 = vmul.f32 0.4342945, %v960_v23  ;;  %v988_v58 = vmul.f32 0.4342945, %v962_v51  ;;  %v989_v42 = vmul.f32 0.4342945, %v964_v50 }
 0x167   : > { %1528 = vlog2.f32 %v947_v10  ;;  %v1006_v30 = vmax.f32 %v2034_v35, 1e-10  ;;  %v1007_v6 = vmax.f32 %v2541_v34, 1e-10  ;;  %v1008_v53 = vmax.f32 %v2542_v39, 1e-10 }
 0x168   : > { %1530 = vlog2.f32 %v948_v9  ;;  %v1009_v12 = vmax.f32 %v2085_v40, 1e-10  ;;  %v1010_v36 = vmax.f32 %v2101_v2, 1e-10  ;;  %v2543_v61 = vld [vmem:[#allocation11_spill] sm:$0xff]  ;;  %v2546_v35 = vld [vmem:[#allocation8_spill] sm:$0xff] }
 0x169   : > { %1532 = vlog2.f32 %v949_v7  ;;  %v1024_v37 = vmul.f32 0.6931472, %v2543_v61  ;;  %v1026_v25 = vmul.f32 0.6931472, %v2544_v45  ;;  %v1011_v41 = vmax.f32 %v2116_v54, 1e-10 }
 0x16a   : > { %1534 = vlog2.f32 %v950_v52  ;;  %v1028_v11 = vmul.f32 0.6931472, %v2545_v57  ;;  %v1050_v38 = vmul.f32 0.4342945, %v2546_v35  ;;  %v1012_v43 = vmax.f32 %v2124_v62, 1e-10 }
 0x16b   : > { %1536 = vlog2.f32 %v1006_v30  ;;  %v1051_v15 = vmul.f32 0.4342945, %v1024_v37  ;;  %v1052_v10 = vmul.f32 0.4342945, %v1026_v25  ;;  %v1013_v63 = vmax.f32 %v2136_v8, 1e-10 }
 0x16c   : > { %v1519_v40 = vpop.eup %1518  ;;  %1538 = vlog2.f32 %v1007_v6  ;;  %v1053_v2 = vmul.f32 0.4342945, %v1028_v11  ;;  %v1066_v23 = vsub.f32 %v986_v4, %v1050_v38  ;;  %v1014_v7 = vmax.f32 %v2142_v47, 1e-10 }
 0x16d   : > { %v1521_v51 = vpop.eup %1520  ;;  %v966_v14 = vmul.f32 0.6931472, %v1519_v40  ;;  %1540 = vlog2.f32 %v1008_v53  ;;  %v1067_v50 = vsub.f32 %v987_v22, %v1051_v15  ;;  %v1068_v54 = vsub.f32 %v988_v58, %v1052_v10 }
 0x16e   : > { %v1523_v9 = vpop.eup %1522  ;;  %1542 = vlog2.f32 %v1009_v12  ;;  %v1069_v52 = vsub.f32 %v989_v42, %v1053_v2  ;;  %v1079_v62 = vand.u32 2147483647, %v1063_v3  ;;  %v968_v34 = vmul.f32 0.6931472, %v1521_v51 }
 0x16f   : > { %v1525_v30 = vpop.eup %1524  ;;  %1544 = vlog2.f32 %v1010_v36  ;;  %v1080_v8 = vand.u32 2147483647, %v1064_v46  ;;  %v1081_v4 = vand.u32 2147483647, %v1065_v48  ;;  %v970_v58 = vmul.f32 0.6931472, %v1523_v9 }
 0x170   : > { %v1527_v22 = vpop.eup %1526  ;;  %v990_v47 = vmul.f32 0.4342945, %v966_v14  ;;  %1546 = vlog2.f32 %v1011_v41  ;;  %v1082_v42 = vand.u32 2147483647, %v1066_v23  ;;  %v972_v39 = vmul.f32 0.6931472, %v1525_v30 }
 0x171   : > { %v1529_v6 = vpop.eup %1528  ;;  %1548 = vlog2.f32 %v1012_v43  ;;  %v1083_v16 = vand.u32 2147483647, %v1067_v50  ;;  %v1084_v21 = vand.u32 2147483647, %v1068_v54  ;;  %v974_v53 = vmul.f32 0.6931472, %v1527_v22 }
 0x172   : > { %v1531_v3 = vpop.eup %1530  ;;  %1550 = vlog2.f32 %v1013_v63  ;;  %v1085_v12 = vand.u32 2147483647, %v1069_v52  ;;  %v1111_v33 = vadd.f32 %v1079_v62, %v2547_v29  ;;  %v976_v36 = vmul.f32 0.6931472, %v1529_v6 }
 0x173   : > { %v1533_v46 = vpop.eup %1532  ;;  %v991_v44 = vmul.f32 0.4342945, %v968_v34  ;;  %1552 = vlog2.f32 %v1014_v7  ;;  %v1112_v48 = vadd.f32 %v1080_v8, %v2548_v26  ;;  %v978_v37 = vmul.f32 0.6931472, %v1531_v3 }
 0x174   : > { %v1535_v61 = vpop.eup %1534  ;;  %v992_v45 = vmul.f32 0.4342945, %v970_v58  ;;  %v1113_v25 = vadd.f32 %v1081_v4, %v2344_v56  ;;  %v1114_v41 = vadd.f32 %v1082_v42, %v2346_v59  ;;  %v980_v11 = vmul.f32 0.6931472, %v1533_v46 }
 0x175   : > { %v1537_v57 = vpop.eup %1536  ;;  %v993_v35 = vmul.f32 0.4342945, %v972_v39  ;;  %v1115_v38 = vadd.f32 %v1083_v16, %v2350_v13  ;;  %v2445_v43 = vadd.f32 %v1084_v21, %v2352_v60  ;;  %v994_v10 = vmul.f32 0.4342945, %v974_v53 }
 0x176   : > { %v1539_v15 = vpop.eup %1538  ;;  %v1030_v40 = vmul.f32 0.6931472, %v1537_v57  ;;  %v2448_v63 = vadd.f32 %v1085_v12, %v2354_v24  ;;  %v1178_v2 = vadd.f32 %v1112_v48, %v1111_v33  ;;  %v982_v51 = vmul.f32 0.6931472, %v1535_v61 }
 0x177   : > { %v1541_v23 = vpop.eup %1540  ;;  %v995_v56 = vmul.f32 0.4342945, %v976_v36  ;;  %v1032_v14 = vmul.f32 0.6931472, %v1539_v15  ;;  %v996_v50 = vmul.f32 0.4342945, %v978_v37 }
 0x178   : > { %v1543_v59 = vpop.eup %1542  ;;  %v1034_v54 = vmul.f32 0.6931472, %v1541_v23  ;;  %v1054_v9 = vmul.f32 0.4342945, %v1030_v40  ;;  %v1179_v7 = vadd.f32 %v1178_v2, %v1113_v25  ;;  %v997_v52 = vmul.f32 0.4342945, %v980_v11 }
 0x179   : > { %v1545_v13 = vpop.eup %1544  ;;  %v1036_v60 = vmul.f32 0.6931472, %v1543_v59  ;;  %v1055_v62 = vmul.f32 0.4342945, %v1032_v14  ;;  %v998_v58 = vmul.f32 0.4342945, %v982_v51 }
 0x17a   : > { %v1547_v30 = vpop.eup %1546  ;;  %v1038_v34 = vmul.f32 0.6931472, %v1545_v13  ;;  %v1056_v8 = vmul.f32 0.4342945, %v1034_v54  ;;  %v1070_v4 = vsub.f32 %v990_v47, %v1054_v9  ;;  %v1180_v24 = vadd.f32 %v1179_v7, %v1114_v41 }
 0x17b   : > { %v1549_v22 = vpop.eup %1548  ;;  %v1040_v42 = vmul.f32 0.6931472, %v1547_v30  ;;  %v1057_v6 = vmul.f32 0.4342945, %v1036_v60  ;;  %v1071_v39 = vsub.f32 %v991_v44, %v1055_v62 }
 0x17c   : > { %v1551_v16 = vpop.eup %1550  ;;  %v1042_v21 = vmul.f32 0.6931472, %v1549_v22  ;;  %v1058_v3 = vmul.f32 0.4342945, %v1038_v34  ;;  %v1072_v53 = vsub.f32 %v992_v45, %v1056_v8  ;;  %v1086_v12 = vand.u32 2147483647, %v1070_v4 }
 0x17d   : > { %v1553_v29 = vpop.eup %1552  ;;  %v1044_v33 = vmul.f32 0.6931472, %v1551_v16  ;;  %v1059_v46 = vmul.f32 0.4342945, %v1040_v42  ;;  %v1073_v36 = vsub.f32 %v993_v35, %v1057_v6  ;;  %v1087_v26 = vand.u32 2147483647, %v1071_v39 }
 0x17e   : > { %v1046_v48 = vmul.f32 0.6931472, %v1553_v29  ;;  %v1060_v61 = vmul.f32 0.4342945, %v1042_v21  ;;  %v1074_v37 = vsub.f32 %v994_v10, %v1058_v3  ;;  %v1088_v47 = vand.u32 2147483647, %v1072_v53 }
 0x17f   : > { %v1061_v25 = vmul.f32 0.4342945, %v1044_v33  ;;  %v1075_v41 = vsub.f32 %v995_v56, %v1059_v46  ;;  %v1089_v57 = vand.u32 2147483647, %v1073_v36  ;;  %v1118_v11 = vadd.f32 %v1086_v12, %v2364_v5 }
 0x180   : > { %v1062_v44 = vmul.f32 0.4342945, %v1046_v48  ;;  %v1076_v15 = vsub.f32 %v996_v50, %v1060_v61  ;;  %v1090_v40 = vand.u32 2147483647, %v1074_v37  ;;  %v1119_v45 = vadd.f32 %v1087_v26, %v2366_v20 }
 0x181   : > { %v1077_v2 = vsub.f32 %v997_v52, %v1061_v25  ;;  %v1091_v23 = vand.u32 2147483647, %v1075_v41  ;;  %v1120_v51 = vadd.f32 %v1088_v47, %v2375_v28  ;;  %v1121_v35 = vadd.f32 %v1089_v57, %v2377_v19 }
 0x182   : > { %v1078_v14 = vsub.f32 %v998_v58, %v1062_v44  ;;  %v1092_v59 = vand.u32 2147483647, %v1076_v15  ;;  %v1122_v10 = vadd.f32 %v1090_v40, %v2381_v49  ;;  %v1181_v54 = vadd.f32 %v1180_v24, %v1115_v38 }
 0x183   : > { %v933_v5 = vand.u32 2147483647, %v917_v0  ;;  %v1093_v56 = vand.u32 2147483647, %v1077_v2  ;;  %v1123_v50 = vadd.f32 %v1091_v23, %v2383_v27  ;;  %v934_v20 = vand.u32 2147483647, %v918_v55 }
 0x184   : > { %v1094_v9 = vand.u32 2147483647, %v1078_v14  ;;  %v1124_v28 = vadd.f32 %v1092_v59, %v2412_v32  ;;  %v1182_v19 = vadd.f32 %v1181_v54, %v2445_v43 }
 0x185   : > { %v1125_v7 = vadd.f32 %v1093_v56, %v933_v5 }
 0x186   : > { %v1126_v13 = vadd.f32 %v1094_v9, %v934_v20  ;;  %v1183_v49 = vadd.f32 %v1182_v19, %v2448_v63 }
 0x188   : > { %v1184_v38 = vadd.f32 %v1183_v49, %v1118_v11 }
 0x18a   : > { %v1185_v52 = vadd.f32 %v1184_v38, %v1119_v45 }
 0x18c   : > { %v1186_v1 = vadd.f32 %v1185_v52, %v1120_v51 }
 0x18e   : > { %v1187_v31 = vadd.f32 %v1186_v1, %v1121_v35 }
 0x190   : > { %v1188_v0 = vadd.f32 %v1187_v31, %v1122_v10 }
 0x192   : > { %v1189_v27 = vadd.f32 %v1188_v0, %v1123_v50 }
 0x194   : > { %v1190_v60 = vadd.f32 %v1189_v27, %v1124_v28 }
 0x196   : > { %v1191_v17 = vadd.f32 %v1190_v60, %v1125_v7 }
 0x198   : > { %v1192_v18 = vadd.f32 %v1191_v17, %v1126_v13 }
 0x19a   : > { %1193 = vadd.xlane.f32.xlu0 %v1192_v18 }
 0x227   : > { %v1194_v55 = vpop.xlane.xlu0 %1193 }
 0x228   : > { %v1195_v32 = vrot.slane %v1194_v55, 4 }
 0x22a   : > { %v1196_v62 = vadd.f32 %v1195_v32, %v1194_v55 }
 0x22c   : > { %v1197_v43 = vrot.slane %v1196_v62, 2 }
 0x22e   : > { %v1198_v30 = vadd.f32 %v1197_v43, %v1196_v62 }
 0x230   : > { %v1199_v34 = vrot.slane %v1198_v30, 1 }
 0x232   : > { %v1200_v63 = vadd.f32 %v1199_v34, %v1198_v30 }
 0x234   : > { %1340 = vpush %v1200_v63 }
 0x265   : > { %s1341_s30 = spop %1340 }
 0x266   : > { %v1202_v8 = vstv %s1341_s30 }
 0x267   : > { %1204 = vst [vmem:[%s152_s27] sm:$0x1] %v1202_v8 }
 0x268   : > { %1567 = shalt.err (!%p1564_p5)
}
 0x269   : > { %s1568_s16 = scalar_lea.hbm %s2472_s5, 16  ;;  %s1572_s23 = scalar_lea.hbm %s2519_s2, 32 }
 0x26a   : > { %p1569_p6 = scmp.ne.s32.totalorder %s2472_s5, %s1568_s16  ;;  %p1573_p10 = scmp.lt.u32.totalorder %s2472_s5, %s2519_s2 }
 0x26b   : > { %p1574_p11 = scmp.lt.u32.totalorder %s1572_s23, %s1568_s16  ;;  %p1576_p13 = scmp.lt.u32.totalorder %s1568_s16, %s2472_s5 }
 0x26c   : > { %p1570_p7 = pnand %p1569_p6, %p1691_p4 }
 0x26d   : > { %p1575_p12 = por %p1574_p11, %p1573_p10 }
 0x26e   : > { %p1571_p9 = pneg %p1570_p7 }
 0x26f   : > { %p1577_p0 = por %p1576_p13, %p1575_p12 }
 0x271   : > { %p1578_p1 = pnand %p1577_p0, %p1571_p9 }
 0x273   : > { %1581 = shalt.err (!%p1578_p1)
}
 0x274   : > { %1342 = dma.vmem_to_hbm [thread:$0]  (%p1691_p4), %s2467_s28, 16, %s2472_s5, %s1206_s6  }
 0x275 PF: > { %p1348_p2 = scmp.ge.s32.totalorder %s1632_s14, 2  ;;  %s1230_s26 = sand.u32 1, %s1612_s9  }
 0x276   : > { %s1231_s27 = scalar_lea.sflag [#allocation4], %s1230_s26 }
 0x277   : > { %p1345_p3 = pnand %p1348_p2, %p1698_p8 }
 0x279   : > { %1607 = dma.done.wait (!%p1345_p3), %s1231_s27, 16  }
 0x27a   : > { %1609 = vsyncadd (!%p1345_p3), %s1231_s27, 4294967280  ;;  %s15_s14 = sadd.s32 1, %s1632_s14   ;;  %s2549_s9 = smov %s1616_s10 }
 0x27b   : > { %p12_p5 = scmp.ge.s32.totalorder %s15_s14, 4   ;;  %s2550_s10 = smov %s1620_s11 }
 0x27c   : > { %s2551_s11 = smov %s1704_s22  ;;  %s2552_s12 = smov %s1628_s13 }
 0x27d   : > { %s2553_s13 = smov %s2555_s17  ;;  %14 = sbr.rel (!%p12_p5) target bundleno = 4 (0x4), region = 71 }
 0x284   :  { %1235 = vsyncpa [#allocation4], 1 }
 0x285   :  { %1237 = vsyncpa [#allocation4 + $0x1], 1 }

// kernel: tpu_custom_call.1
= control target key start
LH: loop header
LB: loop body
LE: loop exit
PB: predicated region body
PF: predicated region fallthrough
CT: control target
= control target key end

     0   :  { %7 = vsyncpa [#allocation4], 0  ;;  %s2517_s0 = inlined_call_operand.vmem [shape: bf16[2,256,64], index: 0, kind: input, shape index: {}]   ;;  %s2518_s1 = inlined_call_operand.vmem [shape: bf16[64,256], index: 1, kind: input, shape index: {}]   ;;  %s2519_s2 = inlined_call_operand.hbm [shape: f32[1,256], index: 2, kind: output, shape index: {}]  }
   0x1   :  { %9 = vsyncpa [#allocation4 + $0x1], 0  ;;  %s1651_s9 = smov 0   ;;  %s1653_s10 = smov 0  }
   0x2   :  { %s1655_s11 = smov 0   ;;  %s1657_s12 = smov 0  }
   0x3   :  { %s1659_s13 = smov 0   ;;  %s1661_s14 = smov 0  }
   0x4 LB: > { %s1281_s15 = sadd.s32 4294967295, %s1632_s14   ;;  %s1282_s16 = sadd.s32 4294967294, %s1632_s14   ;;  %s1632_s14 = sphi %s1661_s14, %s15_s14   ;;  %s1628_s13 = sphi %s1659_s13, %s2553_s13   ;;  %s1624_s12 = sphi %s1657_s12, %s2552_s12   ;;  %s1620_s11 = sphi %s1655_s11, %s2551_s11   ;;  %s1616_s10 = sphi %s1653_s10, %s2550_s10   ;;  %s1612_s9 = sphi %s1651_s9, %s2549_s9  }
   0x5   : > { %s27_s17 = sadd.s32 1, %s1628_s13  ;;  %s83_s18 = sadd.s32 1, %s1620_s11 }
   0x6   : > { %p29_p0 = scmp.ge.s32.totalorder %s27_s17, 2  ;;  %p93_p1 = scmp.ne.s32.totalorder %s1620_s11, %s1616_s10 }
   0x7   : > { %p94_p2 = scmp.eq.s32.totalorder %s1281_s15, 1  ;;  %p99_p3 = scmp.ne.s32.totalorder %s1616_s10, %s1612_s9 }
   0x8   : > { %s2555_s17 = smov (%p29_p0, %s27_s17), 0  ;;  %p100_p5 = scmp.eq.s32.totalorder %s1282_s16, 1 }
   0x9   : > { %p1691_p4 = por %p94_p2, %p93_p1  ;;  %s80_s20 = ssub.s32 %s1628_s13, %s2555_s17 }
   0xa   : > { %p1285_p6 = scmp.ge.s32.totalorder %s1632_s14, 1  ;;  %p81_p7 = scmp.eq.s32.totalorder %s80_s20, 0 }
   0xb   : > { %p1698_p8 = por %p100_p5, %p99_p3  ;;  %p131_p9 = scmp.lt.s32.totalorder %s1632_s14, 3 }
   0xc   : > { %s1704_s22 = scalar_select %p81_p7, %s1620_s11, %s83_s18  }
   0xd   : > { %p132_p10 = pnand %p1285_p6, %p131_p9 }
   0xf   : > { %135 = sbr.rel (%p132_p10) target bundleno = 629 (0x275), region = 28 }
  0x16   : > { %v1398_v0 = vld [vmem:[%s2518_s1 + $0x4] ss:$8 sps:$4 sm:$0xff]   ;;  %p154_p11 = scmp.lt.s32.totalorder %s1624_s12, 1  ;;  %v1400_v1 = vld [vmem:[%s2518_s1] ss:$8 sps:$4 sm:$0xff]   ;;  %v1634_v2 = vmov 0  }
  0x17   : > { %422 = vmatprep.mubr.bf16.mxu0 %v1634_v2  ;;  %502 = vmatprep.mubr.bf16.mxu1 %v1634_v2  ;;  %v1401_v3 = vld [vmem:[%s2518_s1 + $0x14] ss:$8 sps:$4 sm:$0xff]   ;;  %v1403_v4 = vld [vmem:[%s2518_s1 + $0x10] ss:$8 sps:$4 sm:$0xff]   ;;  %v1404_v5 = vld [vmem:[%s2518_s1 + $0x24] ss:$8 sps:$4 sm:$0xff]  }
  0x18   : > { %390 = vmatprep.subr.bf16.mxu0 %v1398_v0  ;;  %1332 = vmatprep.subr.bf16.mxu1 %v1398_v0  ;;  %s155_s29 = scalar_select %p154_p11, %s1624_s12, 1  ;;  %v1406_v6 = vld [vmem:[%s2518_s1 + $0x20] ss:$8 sps:$4 sm:$0xff]   ;;  %v1407_v7 = vld [vmem:[%s2518_s1 + $0x34] ss:$8 sps:$4 sm:$0xff]   ;;  %vm341_vm0 = vcmask 523264  }
  0x19   : > { %391 = vmatpush1.bf16.msra.mxu0 %v1400_v1  ;;  %1336 = vmatpush1.bf16.msra.mxu1 %v1400_v1  ;;  %v1409_v8 = vld [vmem:[%s2518_s1 + $0x30] ss:$8 sps:$4 sm:$0xff]   ;;  %s151_s26 = sand.u32 1, %s1616_s10  }
  0x1a   : > { %392 = vmatprep.subr.bf16.mxu0 %v1401_v3  ;;  %1333 = vmatprep.subr.bf16.mxu1 %v1401_v3  ;;  %s1331_s6 = sshll.u32 %s155_s29, 7  ;;  %s152_s27 = scalar_lea.vmem [#allocation3], %s151_s26 }
  0x1b   : > { %s1728_s15 = scalar_lea.vmem %s2517_s0, %s1331_s6  ;;  %s1218_s28 = sshll.u32 %s152_s27, 4  ;;  %s2467_s28 = int_to_ptr.vmem [resolvable:$true] %s1218_s28 }
  0x1c   : > { %v1410_v9 = vld [vmem:[%s1728_s15] sm:$0xff]   ;;  %v1412_v11 = vld [vmem:[%s1728_s15 + $0x8] sm:$0xff]   ;;  %v1414_v13 = vld [vmem:[%s1728_s15 + $0x10] sm:$0xff]   ;;  %s1328_s29 = sshll.u32 %s1624_s12, 4  ;;  %s1206_s6 = scalar_lea.sflag [#allocation4], %s151_s26 }
  0x1d   : > { %393 = vmatpush1.bf16.msra.mxu0 %v1403_v4  ;;  %1337 = vmatpush1.bf16.msra.mxu1 %v1403_v4  ;;  %v1411_v10 = vld [vmem:[%s1728_s15 + $0x40] sm:$0xff]   ;;  %v1413_v12 = vld [vmem:[%s1728_s15 + $0x48] sm:$0xff]   ;;  %v1415_v14 = vld [vmem:[%s1728_s15 + $0x50] sm:$0xff]   ;;  %s2472_s5 = scalar_lea.hbm %s2519_s2, %s1328_s29  ;;  %s1554_s7 = scalar_lea.vmem %s2467_s28, 16 }
  0x1e   : > { %394 = vmatprep.subr.bf16.mxu0 %v1404_v5  ;;  %1334 = vmatprep.subr.bf16.mxu1 %v1404_v5  ;;  %v1416_v15 = vld [vmem:[%s1728_s15 + $0x18] sm:$0xff]   ;;  %v1418_v17 = vld [vmem:[%s1728_s15 + $0x20] sm:$0xff]   ;;  %v1420_v19 = vld [vmem:[%s1728_s15 + $0x28] sm:$0xff]   ;;  %p1555_p12 = scmp.ne.s32.totalorder %s2467_s28, %s1554_s7  ;;  %s1635_s12 = smov [#allocation3]  }
  0x1f   : > { %v1417_v16 = vld [vmem:[%s1728_s15 + $0x58] sm:$0xff]   ;;  %v1419_v18 = vld [vmem:[%s1728_s15 + $0x60] sm:$0xff]   ;;  %v1421_v20 = vld [vmem:[%s1728_s15 + $0x68] sm:$0xff]   ;;  %s1558_s8 = sshll.u32 %s1635_s12, 4  ;;  %s1559_s8 = int_to_ptr.vmem [resolvable:$false] %s1558_s8 }
  0x20   : > { %v1422_v21 = vld [vmem:[%s1728_s15 + $0x30] sm:$0xff]   ;;  %v1424_v23 = vld [vmem:[%s1728_s15 + $0x38] sm:$0xff]   ;;  %p1556_p13 = pnand %p1555_p12, %p1691_p4  ;;  %p1561_p1 = scmp.lt.s32.totalorder %s2467_s28, %s1559_s8 }
  0x21   : > { %395 = vmatpush1.bf16.msra.mxu0 %v1406_v6  ;;  %1338 = vmatpush1.bf16.msra.mxu1 %v1406_v6  ;;  %v1423_v22 = vld [vmem:[%s1728_s15 + $0x70] sm:$0xff]   ;;  %v1425_v24 = vld [vmem:[%s1728_s15 + $0x78] sm:$0xff]   ;;  %s1560_s15 = scalar_lea.vmem %s1559_s8, 32 }
  0x22   : > { %396 = vmatprep.subr.bf16.mxu0 %v1407_v7  ;;  %1335 = vmatprep.subr.bf16.mxu1 %v1407_v7  ;;  %p1557_p0 = pneg %p1556_p13  ;;  %p1562_p2 = scmp.lt.s32.totalorder %s1560_s15, %s1554_s7 }
  0x24   : > { %p1563_p3 = por %p1562_p2, %p1561_p1 }
  0x25   : > { %397 = vmatpush1.bf16.msra.mxu0 %v1409_v8  ;;  %1339 = vmatpush1.bf16.msra.mxu1 %v1409_v8 }
  0x26   : > { %p1564_p5 = pnand %p1563_p3, %p1557_p0 }
  0x28   : > { %1312 = vmatmul.mubr.msk.bf16.vlgmr.msra.gmra.mrb[0].mxu0 %vm341_vm0, %v1410_v9  ;;  %1320 = vmatmul.mubr.msk.bf16.vlgmr.msra.gmra.mrb[0].mxu1 %vm341_vm0, %v1411_v10 }
  0x29   : > { %432 = vmatprep.mubr.bf16.mxu0 %v1634_v2  ;;  %512 = vmatprep.mubr.bf16.mxu1 %v1634_v2 }
  0x30   : > { %1313 = vmatmul.mubr.msk.bf16.gmra.mrb[4].mxu0 %vm341_vm0, %v1412_v11  ;;  %1321 = vmatmul.mubr.msk.bf16.gmra.mrb[4].mxu1 %vm341_vm0, %v1413_v12 }
  0x31   : > { %442 = vmatprep.mubr.bf16.mxu0 %v1634_v2  ;;  %522 = vmatprep.mubr.bf16.mxu1 %v1634_v2 }
  0x38   : > { %1314 = vmatmul.mubr.msk.bf16.gmra.mrb[8].mxu0 %vm341_vm0, %v1414_v13  ;;  %1322 = vmatmul.mubr.msk.bf16.gmra.mrb[8].mxu1 %vm341_vm0, %v1415_v14 }
  0x39   : > { %452 = vmatprep.mubr.bf16.mxu0 %v1634_v2  ;;  %532 = vmatprep.mubr.bf16.mxu1 %v1634_v2 }
  0x40   : > { %1315 = vmatmul.mubr.msk.bf16.gmra.mrb[12].mxu0 %vm341_vm0, %v1416_v15  ;;  %1323 = vmatmul.mubr.msk.bf16.gmra.mrb[12].mxu1 %vm341_vm0, %v1417_v16 }
  0x41   : > { %462 = vmatprep.mubr.bf16.mxu0 %v1634_v2  ;;  %542 = vmatprep.mubr.bf16.mxu1 %v1634_v2 }
  0x48   : > { %1316 = vmatmul.mubr.msk.bf16.gmra.mrb[16].mxu0 %vm341_vm0, %v1418_v17  ;;  %1324 = vmatmul.mubr.msk.bf16.gmra.mrb[16].mxu1 %vm341_vm0, %v1419_v18 }
  0x49   : > { %472 = vmatprep.mubr.bf16.mxu0 %v1634_v2  ;;  %552 = vmatprep.mubr.bf16.mxu1 %v1634_v2 }
  0x50   : > { %1317 = vmatmul.mubr.msk.bf16.gmra.mrb[20].mxu0 %vm341_vm0, %v1420_v19  ;;  %1325 = vmatmul.mubr.msk.bf16.gmra.mrb[20].mxu1 %vm341_vm0, %v1421_v20 }
  0x51   : > { %482 = vmatprep.mubr.bf16.mxu0 %v1634_v2  ;;  %562 = vmatprep.mubr.bf16.mxu1 %v1634_v2 }
  0x58   : > { %1318 = vmatmul.mubr.msk.bf16.gmra.mrb[24].mxu0 %vm341_vm0, %v1422_v21  ;;  %1326 = vmatmul.mubr.msk.bf16.gmra.mrb[24].mxu1 %vm341_vm0, %v1423_v22 }
  0x59   : > { %492 = vmatprep.mubr.bf16.mxu0 %v1634_v2  ;;  %572 = vmatprep.mubr.bf16.mxu1 %v1634_v2 }
  0x60   : > { %1319 = vmatmul.mubr.msk.bf16.gmra.mrb[28].mxu0 %vm341_vm0, %v1424_v23  ;;  %1327 = vmatmul.mubr.msk.bf16.gmra.mrb[28].mxu1 %vm341_vm0, %v1425_v24 }
  0xfb   : > { %v424_v25 = vpop.f32.mrb[0].mxu0  ;;  %v504_v26 = vpop.f32.mrb[0].mxu1 }
  0xfc   : > { %v583_v27 = vmul.f32 %v424_v25, %v424_v25  ;;  %v599_v28 = vmul.f32 %v504_v26, %v504_v26  ;;  %v426_v29 = vpop.f32.mrb[1].mxu0  ;;  %v506_v30 = vpop.f32.mrb[1].mxu1 }
  0xfd   : > { %v615_v31 = vmul.f32 %v426_v29, %v426_v29  ;;  %v631_v32 = vmul.f32 %v506_v30, %v506_v30  ;;  %v428_v33 = vpop.f32.mrb[2].mxu0  ;;  %v508_v34 = vpop.f32.mrb[2].mxu1 }
  0xfe   : > { %v584_v35 = vmul.f32 %v428_v33, %v428_v33  ;;  %v600_v36 = vmul.f32 %v508_v34, %v508_v34  ;;  %v430_v37 = vpop.f32.mrb[3].mxu0  ;;  %v510_v38 = vpop.f32.mrb[3].mxu1 }
  0xff   : > { %v647_v39 = vadd.f32 %v615_v31, %v583_v27  ;;  %v1785_v40 = vadd.f32 %v631_v32, %v599_v28  ;;  %v616_v41 = vmul.f32 %v430_v37, %v430_v37  ;;  %v632_v42 = vmul.f32 %v510_v38, %v510_v38 }
 0x101   : > { %1426 = vrsqrt.f32 %v647_v39  ;;  %v935_v43 = vmax.f32 %v647_v39, 1e-10  ;;  %v1788_v44 = vadd.f32 %v616_v41, %v584_v35  ;;  %v1790_v45 = vadd.f32 %v632_v42, %v600_v36 }
 0x102   : > { %1428 = vrsqrt.f32 %v1785_v40  ;;  %v999_v48 = vmax.f32 %v1785_v40, 1e-10  ;;  %vm681_vm1 = vcmp.eq.f32.partialorder %v647_v39, inf  ;;  %vm683_vm2 = vcmp.eq.f32.partialorder %v647_v39, 0.0 }
 0x103   : > { %v434_v46 = vpop.f32.mrb[4].mxu0  ;;  %v514_v47 = vpop.f32.mrb[4].mxu1  ;;  %1430 = vlog2.f32 %v935_v43  ;;  %v936_v54 = vmax.f32 %v1788_v44, 1e-10  ;;  %v1000_v60 = vmax.f32 %v1790_v45, 1e-10 }
 0x104   : > { %v436_v49 = vpop.f32.mrb[5].mxu0  ;;  %v516_v50 = vpop.f32.mrb[5].mxu1  ;;  %v585_v51 = vmul.f32 %v434_v46, %v434_v46  ;;  %1432 = vrsqrt.f32 %v1788_v44  ;;  %v601_v55 = vmul.f32 %v514_v47, %v514_v47  ;;  %v684_v8 = vand.u32 2147483648, %v647_v39 }
 0x105   : > { %v438_v52 = vpop.f32.mrb[6].mxu0  ;;  %v518_v53 = vpop.f32.mrb[6].mxu1  ;;  %1434 = vrsqrt.f32 %v1790_v45  ;;  %v617_v58 = vmul.f32 %v436_v49, %v436_v49  ;;  %v633_v59 = vmul.f32 %v516_v50, %v516_v50  ;;  %vm793_vm3 = vcmp.eq.f32.partialorder %v1785_v40, inf }
 0x106   : > { %v440_v56 = vpop.f32.mrb[7].mxu0  ;;  %v520_v57 = vpop.f32.mrb[7].mxu1  ;;  %1436 = vlog2.f32 %v999_v48  ;;  %v586_v62 = vmul.f32 %v438_v52, %v438_v52  ;;  %v602_v0 = vmul.f32 %v518_v53, %v518_v53  ;;  %v796_v12 = vand.u32 2147483648, %v1785_v40 }
 0x107   : > { %1438 = vlog2.f32 %v936_v54  ;;  %v1797_v61 = vadd.f32 %v617_v58, %v585_v51  ;;  %v1799_v63 = vadd.f32 %v633_v59, %v601_v55  ;;  %v618_v1 = vmul.f32 %v440_v56, %v440_v56 }
 0x108   : > { %v634_v2 = vmul.f32 %v520_v57, %v520_v57  ;;  %vm795_vm4 = vcmp.eq.f32.partialorder %v1785_v40, 0.0  ;;  %vm688_vm5 = vcmp.eq.f32.partialorder %v1788_v44, inf  ;;  %vm690_vm6 = vcmp.eq.f32.partialorder %v1788_v44, 0.0 }
 0x109   : > { %1440 = vrsqrt.f32 %v1797_v61  ;;  %v937_v16 = vmax.f32 %v1797_v61, 1e-10  ;;  %v1820_v17 = vadd.f32 %v618_v1, %v586_v62  ;;  %v691_v29 = vand.u32 2147483648, %v1788_v44 }
 0x10a   : > { %1442 = vrsqrt.f32 %v1799_v63  ;;  %v1822_v18 = vadd.f32 %v634_v2, %v602_v0  ;;  %vm800_vm7 = vcmp.eq.f32.partialorder %v1790_v45, inf  ;;  %vm802_vm8 = vcmp.eq.f32.partialorder %v1790_v45, 0.0 }
 0x10b   : > { %v1427_v3 = vpop.eup %1426  ;;  %v1802_v4 = vpop.f32.mrb[8].mxu0  ;;  %1444 = vlog2.f32 %v1000_v60  ;;  %v803_v32 = vand.u32 2147483648, %v1790_v45  ;;  %vm695_vm9 = vcmp.eq.f32.partialorder %v1797_v61, inf  ;;  %v1001_v35 = vmax.f32 %v1799_v63, 1e-10 }
 0x10c   : > { %v1804_v5 = vpop.f32.mrb[8].mxu1  ;;  %v1429_v6 = vpop.eup %1428  ;;  %v680_v7 = vmul.f32 %v1427_v3, %v647_v39  ;;  %1446 = vlog2.f32 %v937_v16  ;;  %vm697_vm10 = vcmp.eq.f32.partialorder %v1797_v61, 0.0  ;;  %v698_v46 = vand.u32 2147483648, %v1797_v61 }
 0x10d   : > { %v1807_v9 = vpop.f32.mrb[9].mxu0  ;;  %v1809_v10 = vpop.f32.mrb[9].mxu1  ;;  %v792_v11 = vmul.f32 %v1429_v6, %v1785_v40  ;;  %1448 = vrsqrt.f32 %v1820_v17  ;;  %vm807_vm11 = vcmp.eq.f32.partialorder %v1799_v63, inf  ;;  %vm809_vm12 = vcmp.eq.f32.partialorder %v1799_v63, 0.0 }
 0x10e   : > { %v1814_v13 = vpop.f32.mrb[10].mxu0  ;;  %v1816_v14 = vpop.f32.mrb[10].mxu1  ;;  %v682_v15 = vsel %vm681_vm1, %v647_v39, %v680_v7  ;;  %1450 = vrsqrt.f32 %v1822_v18  ;;  %v587_v56 = vmul.f32 %v1802_v4, %v1802_v4  ;;  %v603_v57 = vmul.f32 %v1804_v5, %v1804_v5 }
 0x10f   : > { %v1824_v19 = vpop.f32.mrb[11].mxu0  ;;  %v1826_v20 = vpop.f32.mrb[11].mxu1  ;;  %v1829_v22 = vsel %vm683_vm2, %v684_v8, %v682_v15  ;;  %v794_v23 = vsel %vm793_vm3, %v1785_v40, %v792_v11  ;;  %1452 = vlog2.f32 %v1001_v35  ;;  %v938_v59 = vmax.f32 %v1820_v17, 1e-10 }
 0x110   : > { %v1431_v21 = vpop.eup %1430  ;;  %v1833_v25 = vsel %vm795_vm4, %v796_v12, %v794_v23  ;;  %v619_v60 = vmul.f32 %v1807_v9, %v1807_v9  ;;  %v635_v62 = vmul.f32 %v1809_v10, %v1809_v10  ;;  %v1002_v3 = vmax.f32 %v1822_v18, 1e-10 }
 0x111   : > { %v1433_v24 = vpop.eup %1432  ;;  %v903_v27 = vsub.f32 %v1829_v22, %v1833_v25  ;;  %v952_v49 = vmul.f32 0.6931472, %v1431_v21  ;;  %vm702_vm13 = vcmp.eq.f32.partialorder %v1820_v17, inf  ;;  %1454 = vlog2.f32 %v938_v59 }
 0x112   : > { %v1435_v26 = vpop.eup %1434  ;;  %v687_v28 = vmul.f32 %v1433_v24, %v1788_v44  ;;  %v1906_v6 = vadd.f32 %v619_v60, %v587_v56  ;;  %v1908_v7 = vadd.f32 %v635_v62, %v603_v57  ;;  %1456 = vlog2.f32 %v1002_v3 }
 0x113   : > { %v1437_v30 = vpop.eup %1436  ;;  %v799_v31 = vmul.f32 %v1435_v26, %v1790_v45  ;;  %v1849_v36 = vpop.f32.mrb[12].mxu0  ;;  %v1921_v16 = vmul.f32 0.4342945, %v952_v49  ;;  %v705_v35 = vand.u32 2147483648, %v1820_v17  ;;  %vm814_vm14 = vcmp.eq.f32.partialorder %v1822_v18, inf }
 0x114   : > { %v1439_v33 = vpop.eup %1438  ;;  %v689_v34 = vsel %vm688_vm5, %v1788_v44, %v687_v28  ;;  %v1851_v37 = vpop.f32.mrb[12].mxu1  ;;  %v1016_v0 = vmul.f32 0.6931472, %v1437_v30  ;;  %v1932_v28 = vand.u32 2147483647, %v903_v27  ;;  %v588_v30 = vmul.f32 %v1814_v13, %v1814_v13 }
 0x115   : > { %v1855_v38 = vsel %vm690_vm6, %v691_v29, %v689_v34  ;;  %v801_v39 = vsel %vm800_vm7, %v1790_v45, %v799_v31  ;;  %v1860_v40 = vpop.f32.mrb[13].mxu0  ;;  %v1862_v41 = vpop.f32.mrb[13].mxu1  ;;  %v810_v45 = vand.u32 2147483648, %v1799_v63  ;;  %v954_v4 = vmul.f32 0.6931472, %v1439_v33 }
 0x116   : > { %v1441_v42 = vpop.eup %1440  ;;  %v1866_v43 = vsel %vm802_vm8, %v803_v32, %v801_v39  ;;  %v1871_v44 = vpop.f32.mrb[14].mxu0  ;;  %v1923_v21 = vmul.f32 0.4342945, %v1016_v0  ;;  %2524 = vst [vmem:[#allocation6_spill] sm:$0xff] %v1932_v28  ;;  %vm704_vm15 = vcmp.eq.f32.partialorder %v1820_v17, 0.0  ;;  %v604_v25 = vmul.f32 %v1816_v14, %v1816_v14 }
 0x117   : > { %v1873_v47 = vpop.f32.mrb[14].mxu1  ;;  %v1443_v48 = vpop.eup %1442  ;;  %v904_v50 = vsub.f32 %v1855_v38, %v1866_v43  ;;  %v694_v51 = vmul.f32 %v1441_v42, %v1797_v61  ;;  %v1934_v29 = vmul.f32 0.4342945, %v954_v4  ;;  %v620_v13 = vmul.f32 %v1824_v19, %v1824_v19 }
 0x118   : > { %v460_v52 = vpop.f32.mrb[15].mxu0  ;;  %v1879_v53 = vpop.f32.mrb[15].mxu1  ;;  %v806_v55 = vmul.f32 %v1443_v48, %v1799_v63  ;;  %v636_v27 = vmul.f32 %v1826_v20, %v1826_v20  ;;  %1458 = vrsqrt.f32 %v1906_v6  ;;  %v1003_v48 = vmax.f32 %v1908_v7, 1e-10 }
 0x119   : > { %v1445_v54 = vpop.eup %1444  ;;  %v696_v58 = vsel %vm695_vm9, %v1797_v61, %v694_v51  ;;  %v1958_v49 = vadd.f32 %v620_v13, %v588_v30  ;;  %v589_v14 = vmul.f32 %v1849_v36, %v1849_v36  ;;  %v621_v19 = vmul.f32 %v1860_v40, %v1860_v40 }
 0x11a   : > { %v1896_v1 = vsel %vm697_vm10, %v698_v46, %v696_v58  ;;  %v808_v2 = vsel %vm807_vm11, %v1799_v63, %v806_v55  ;;  %v1018_v8 = vmul.f32 0.6931472, %v1445_v54  ;;  %v1447_v11 = vpop.eup %1446  ;;  %v939_v46 = vmax.f32 %v1906_v6, 1e-10 }
 0x11b   : > { %v1904_v5 = vsel %vm809_vm12, %v810_v45, %v808_v2  ;;  %v1912_v9 = vpop.f32.mrb[16].mxu0  ;;  %v1914_v10 = vpop.f32.mrb[16].mxu1  ;;  %v956_v34 = vmul.f32 0.6931472, %v1447_v11  ;;  %v1960_v51 = vadd.f32 %v636_v27, %v604_v25  ;;  %v605_v20 = vmul.f32 %v1851_v37, %v1851_v37 }
 0x11c   : > { %v1917_v12 = vpop.f32.mrb[17].mxu0  ;;  %v1919_v63 = vpop.f32.mrb[17].mxu1  ;;  %v1942_v33 = vmul.f32 0.4342945, %v1018_v8  ;;  %v637_v45 = vmul.f32 %v1862_v41, %v1862_v41  ;;  %v590_v54 = vmul.f32 %v1871_v44, %v1871_v44  ;;  %v622_v55 = vmul.f32 %v460_v52, %v460_v52 }
 0x11d   : > { %v1449_v15 = vpop.eup %1448  ;;  %v1925_v23 = vpop.f32.mrb[18].mxu0  ;;  %vm816_vm0 = vcmp.eq.f32.partialorder %v1822_v18, 0.0  ;;  %v817_v36 = vand.u32 2147483648, %v1822_v18  ;;  %1460 = vrsqrt.f32 %v1908_v7  ;;  %v1984_v41 = vand.u32 2147483647, %v904_v50 }
 0x11e   : > { %v1927_v24 = vpop.f32.mrb[18].mxu1  ;;  %v1451_v26 = vpop.eup %1450  ;;  %v701_v22 = vmul.f32 %v1449_v15, %v1820_v17  ;;  %v1986_v44 = vmul.f32 0.4342945, %v956_v34  ;;  %1462 = vlog2.f32 %v939_v46  ;;  %v940_v38 = vmax.f32 %v1958_v49, 1e-10 }
 0x11f   : > { %v1938_v31 = vpop.f32.mrb[19].mxu0  ;;  %v1940_v32 = vpop.f32.mrb[19].mxu1  ;;  %v813_v42 = vmul.f32 %v1451_v26, %v1822_v18  ;;  %2525 = vst [vmem:[#allocation7_spill] sm:$0xff] %v1984_v41  ;;  %1464 = vlog2.f32 %v1003_v48  ;;  %v1999_v43 = vadd.f32 %v621_v19, %v589_v14  ;;  %v2005_v4 = vadd.f32 %v637_v45, %v605_v20 }
 0x120   : > { %v1453_v39 = vpop.eup %1452  ;;  %v703_v52 = vsel %vm702_vm13, %v1820_v17, %v701_v22  ;;  %v606_v8 = vmul.f32 %v1873_v47, %v1873_v47  ;;  %v2009_v11 = vadd.f32 %v622_v55, %v590_v54  ;;  %v638_v15 = vmul.f32 %v1879_v53, %v1879_v53 }
 0x121   : > { %v1020_v58 = vmul.f32 0.6931472, %v1453_v39  ;;  %v1455_v62 = vpop.eup %1454  ;;  %v815_v0 = vsel %vm814_vm14, %v1822_v18, %v813_v42  ;;  %1466 = vrsqrt.f32 %v1958_v49  ;;  %v1004_v34 = vmax.f32 %v1960_v51, 1e-10 }
 0x122   : > { %v1457_v3 = vpop.eup %1456  ;;  %v2020_v22 = vsel %vm704_vm15, %v705_v35, %v703_v52  ;;  %v2022_v25 = vmul.f32 0.6931472, %v1455_v62  ;;  %1468 = vrsqrt.f32 %v1960_v51  ;;  %v2028_v53 = vsel %vm816_vm0, %v817_v36, %v815_v0 }
 0x123   : > { %v474_v56 = vpop.f32.mrb[20].mxu0  ;;  %v1972_v57 = vpop.f32.mrb[20].mxu1  ;;  %v2013_v26 = vmul.f32 0.4342945, %v1020_v58  ;;  %v2030_v13 = vmul.f32 0.6931472, %v1457_v3  ;;  %1470 = vlog2.f32 %v940_v38  ;;  %v2034_v35 = vadd.f32 %v638_v15, %v606_v8 }
 0x124   : > { %v1977_v40 = vpop.f32.mrb[21].mxu0  ;;  %v1979_v37 = vpop.f32.mrb[21].mxu1  ;;  %v941_v17 = vmax.f32 %v1999_v43, 1e-10  ;;  %v591_v42 = vmul.f32 %v1912_v9, %v1912_v9  ;;  %v607_v46 = vmul.f32 %v1914_v10, %v1914_v10  ;;  %1472 = vlog2.f32 %v1004_v34 }
 0x125   : > { %v1991_v59 = vpop.f32.mrb[22].mxu0  ;;  %v1993_v60 = vpop.f32.mrb[22].mxu1  ;;  %2526 = vst [vmem:[#allocation8_spill] sm:$0xff] %v2030_v13  ;;  %v623_v14 = vmul.f32 %v1917_v12, %v1917_v12  ;;  %v639_v19 = vmul.f32 %v1919_v63, %v1919_v63  ;;  %v592_v20 = vmul.f32 %v1925_v23, %v1925_v23  ;;  %1474 = vrsqrt.f32 %v1999_v43 }
 0x126   : > { %v2001_v50 = vpop.f32.mrb[23].mxu0  ;;  %v2003_v2 = vpop.f32.mrb[23].mxu1  ;;  %v608_v9 = vmul.f32 %v1927_v24, %v1927_v24  ;;  %v624_v10 = vmul.f32 %v1938_v31, %v1938_v31  ;;  %v640_v55 = vmul.f32 %v1940_v32, %v1940_v32  ;;  %vm709_vm1 = vcmp.eq.f32.partialorder %v1906_v6, inf }
 0x127   : > { %v1459_v39 = vpop.eup %1458  ;;  %1476 = vrsqrt.f32 %v2005_v4  ;;  %v2055_v63 = vadd.f32 %v623_v14, %v591_v42  ;;  %v2057_v23 = vadd.f32 %v639_v19, %v607_v46  ;;  %v593_v52 = vmul.f32 %v474_v56, %v474_v56 }
 0x128   : > { %v1461_v36 = vpop.eup %1460  ;;  %1478 = vlog2.f32 %v941_v17  ;;  %v2061_v31 = vadd.f32 %v624_v10, %v592_v20  ;;  %v2063_v32 = vadd.f32 %v640_v55, %v608_v9  ;;  %v609_v38 = vmul.f32 %v1972_v57, %v1972_v57 }
 0x129   : > { %2527 = vst [vmem:[#allocation9_spill] sm:$0xff] %v2057_v23  ;;  %v2059_v0 = vpop.eup %1462  ;;  %v1005_v8 = vmax.f32 %v2005_v4, 1e-10  ;;  %1480 = vrsqrt.f32 %v2009_v11  ;;  %v625_v56 = vmul.f32 %v1977_v40, %v1977_v40  ;;  %v641_v15 = vmul.f32 %v1979_v37, %v1979_v37 }
 0x12a   : > { %2528 = vst [vmem:[#allocation10_spill] sm:$0xff] %v2063_v32  ;;  %v2067_v3 = vpop.eup %1464  ;;  %1482 = vrsqrt.f32 %v2034_v35  ;;  %v594_v17 = vmul.f32 %v1991_v59, %v1991_v59  ;;  %v610_v57 = vmul.f32 %v1993_v60, %v1993_v60  ;;  %v708_v46 = vmul.f32 %v1459_v39, %v1906_v6 }
 0x12b   : > { %v484_v48 = vpop.f32.mrb[24].mxu0  ;;  %v564_v18 = vpop.f32.mrb[24].mxu1  ;;  %2529 = vst [vmem:[#allocation11_spill] sm:$0xff] %v2067_v3  ;;  %1484 = vrsqrt.f32 %v2055_v63  ;;  %v2083_v14 = vadd.f32 %v625_v56, %v593_v52  ;;  %v2085_v40 = vadd.f32 %v641_v15, %v609_v38  ;;  %vm821_vm2 = vcmp.eq.f32.partialorder %v1908_v7, inf }
 0x12c   : > { %v486_v45 = vpop.f32.mrb[25].mxu0  ;;  %v566_v54 = vpop.f32.mrb[25].mxu1  ;;  %1486 = vrsqrt.f32 %v2061_v31  ;;  %v626_v59 = vmul.f32 %v2001_v50, %v2001_v50  ;;  %v642_v60 = vmul.f32 %v2003_v2, %v2003_v2  ;;  %v595_v19 = vmul.f32 %v484_v48, %v484_v48 }
 0x12d   : > { %v488_v12 = vpop.f32.mrb[26].mxu0  ;;  %v568_v58 = vpop.f32.mrb[26].mxu1  ;;  %v820_v10 = vmul.f32 %v1461_v36, %v1908_v7  ;;  %1488 = vlog2.f32 %v1005_v8  ;;  %v611_v55 = vmul.f32 %v564_v18, %v564_v18  ;;  %v627_v52 = vmul.f32 %v486_v45, %v486_v45 }
 0x12e   : > { %v490_v62 = vpop.f32.mrb[27].mxu0  ;;  %v570_v24 = vpop.f32.mrb[27].mxu1  ;;  %vm716_vm3 = vcmp.eq.f32.partialorder %v1958_v49, inf  ;;  %1490 = vrsqrt.f32 %v2083_v14  ;;  %v2099_v50 = vadd.f32 %v626_v59, %v594_v17  ;;  %v2101_v2 = vadd.f32 %v642_v60, %v610_v57 }
 0x12f   : > { %v1467_v42 = vpop.eup %1466  ;;  %vm828_vm4 = vcmp.eq.f32.partialorder %v1960_v51, inf  ;;  %v2106_v18 = vadd.f32 %v627_v52, %v595_v19  ;;  %v643_v45 = vmul.f32 %v566_v54, %v566_v54  ;;  %v596_v36 = vmul.f32 %v488_v12, %v488_v12 }
 0x130   : > { %v1469_v37 = vpop.eup %1468  ;;  %v612_v8 = vmul.f32 %v568_v58, %v568_v58  ;;  %v710_v17 = vsel %vm709_vm1, %v1906_v6, %v708_v46  ;;  %vm711_vm5 = vcmp.eq.f32.partialorder %v1906_v6, 0.0  ;;  %1492 = vrsqrt.f32 %v2099_v50 }
 0x131   : > { %v2093_v9 = vpop.eup %1470  ;;  %v628_v57 = vmul.f32 %v490_v62, %v490_v62  ;;  %v644_v59 = vmul.f32 %v570_v24, %v570_v24  ;;  %v715_v19 = vmul.f32 %v1467_v42, %v1958_v49  ;;  %vm718_vm6 = vcmp.eq.f32.partialorder %v1958_v49, 0.0 }
 0x132   : > { %v2103_v34 = vpop.eup %1472  ;;  %vm723_vm7 = vcmp.eq.f32.partialorder %v1999_v43, inf  ;;  %v2116_v54 = vadd.f32 %v643_v45, %v611_v55  ;;  %v827_v46 = vmul.f32 %v1469_v37, %v1960_v51  ;;  %1494 = vrsqrt.f32 %v2106_v18 }
 0x133   : > { %v494_v20 = vpop.f32.mrb[28].mxu0  ;;  %v574_v39 = vpop.f32.mrb[28].mxu1  ;;  %2530 = vst [vmem:[#allocation12_spill] sm:$0xff] %v2103_v34  ;;  %v2122_v30 = vadd.f32 %v628_v57, %v596_v36  ;;  %v2124_v62 = vadd.f32 %v644_v59, %v612_v8  ;;  %1496 = vrsqrt.f32 %v2057_v23  ;;  %v2131_v37 = vsel %vm821_vm2, %v1908_v7, %v820_v10 }
 0x134   : > { %v496_v38 = vpop.f32.mrb[29].mxu0  ;;  %v576_v56 = vpop.f32.mrb[29].mxu1  ;;  %v597_v12 = vmul.f32 %v494_v20, %v494_v20  ;;  %v613_v58 = vmul.f32 %v574_v39, %v574_v39  ;;  %v717_v10 = vsel %vm716_vm3, %v1958_v49, %v715_v19  ;;  %vm725_vm8 = vcmp.eq.f32.partialorder %v1999_v43, 0.0 }
 0x135   : > { %v498_v48 = vpop.f32.mrb[30].mxu0  ;;  %v578_v61 = vpop.f32.mrb[30].mxu1  ;;  %v629_v42 = vmul.f32 %v496_v38, %v496_v38  ;;  %v645_v41 = vmul.f32 %v576_v56, %v576_v56  ;;  %1498 = vrsqrt.f32 %v2122_v30  ;;  %vm730_vm9 = vcmp.eq.f32.partialorder %v2009_v11, inf }
 0x136   : > { %v500_v47 = vpop.f32.mrb[31].mxu0  ;;  %v580_v27 = vpop.f32.mrb[31].mxu1  ;;  %v598_v28 = vmul.f32 %v498_v48, %v498_v48  ;;  %v614_v20 = vmul.f32 %v578_v61, %v578_v61  ;;  %1500 = vrsqrt.f32 %v2063_v32  ;;  %vm835_vm10 = vcmp.eq.f32.partialorder %v2005_v4, inf }
 0x137   : > { %v1475_v15 = vpop.eup %1474  ;;  %v630_v39 = vmul.f32 %v500_v47, %v500_v47  ;;  %v646_v45 = vmul.f32 %v580_v27, %v580_v27  ;;  %v2134_v36 = vadd.f32 %v629_v42, %v597_v12  ;;  %v2136_v8 = vadd.f32 %v645_v41, %v613_v58 }
 0x138   : > { %v1477_v60 = vpop.eup %1476  ;;  %v722_v56 = vmul.f32 %v1475_v15, %v1999_v43  ;;  %1502 = vrsqrt.f32 %v2085_v40  ;;  %v2532_v12 = vand.u32 2147483648, %v1906_v6  ;;  %vm732_vm11 = vcmp.eq.f32.partialorder %v2009_v11, 0.0 }
 0x139   : > { %v2118_v52 = vpop.eup %1478  ;;  %v2140_v61 = vadd.f32 %v630_v39, %v598_v28  ;;  %v2142_v47 = vadd.f32 %v646_v45, %v614_v20  ;;  %1504 = vrsqrt.f32 %v2101_v2  ;;  %v2155_v28 = vsel %vm828_vm4, %v1960_v51, %v827_v46 }
 0x13a   : > { %v1481_v24 = vpop.eup %1480  ;;  %v2158_v15 = vmul.f32 %v1477_v60, %v2005_v4  ;;  %1506 = vrsqrt.f32 %v2116_v54  ;;  %v2170_v58 = vsel %vm711_vm5, %v2532_v12, %v710_v17  ;;  %v2533_v60 = vand.u32 2147483648, %v1958_v49 }
 0x13b   : > { %v1483_v55 = vpop.eup %1482  ;;  %v729_v41 = vmul.f32 %v1481_v24, %v2009_v11  ;;  %1508 = vrsqrt.f32 %v2124_v62  ;;  %vm737_vm12 = vcmp.eq.f32.partialorder %v2055_v63, inf  ;;  %vm744_vm13 = vcmp.eq.f32.partialorder %v2061_v31, inf }
 0x13c   : > { %v1485_v13 = vpop.eup %1484  ;;  %v2163_v19 = vmul.f32 %v1483_v55, %v2034_v35  ;;  %v2177_v42 = vsel %vm718_vm6, %v2533_v60, %v717_v10  ;;  %v733_v17 = vand.u32 2147483648, %v2009_v11  ;;  %vm823_vm14 = vcmp.eq.f32.partialorder %v1908_v7, 0.0 }
 0x13d   : > { %v1487_v38 = vpop.eup %1486  ;;  %v736_v59 = vmul.f32 %v1485_v13, %v2055_v63  ;;  %v724_v13 = vsel %vm723_vm7, %v1999_v43, %v722_v56  ;;  %v731_v6 = vsel %vm730_vm9, %v2009_v11, %v729_v41  ;;  %v740_v10 = vand.u32 2147483648, %v2055_v63 }
 0x13e   : > { %v2144_v27 = vpop.eup %1488  ;;  %v743_v46 = vmul.f32 %v1487_v38, %v2061_v31  ;;  %v2534_v38 = vand.u32 2147483648, %v1999_v43  ;;  %v747_v41 = vand.u32 2147483648, %v2061_v31  ;;  %vm830_vm15 = vcmp.eq.f32.partialorder %v1960_v51, 0.0 }
 0x13f   : > { %2531 = vst [vmem:[#allocation13_spill] sm:$0xff] %v2144_v27  ;;  %v1491_v57 = vpop.eup %1490  ;;  %v738_v55 = vsel %vm737_vm12, %v2055_v63, %v736_v59  ;;  %v2204_v59 = vsel %vm732_vm11, %v733_v17, %v731_v6  ;;  %vm739_vm0 = vcmp.eq.f32.partialorder %v2055_v63, 0.0  ;;  %vm746_vm1 = vcmp.eq.f32.partialorder %v2061_v31, 0.0 }
 0x140   : > { %v1493_v24 = vpop.eup %1492  ;;  %v745_v20 = vsel %vm744_vm13, %v2061_v31, %v743_v46  ;;  %v750_v39 = vmul.f32 %v1491_v57, %v2083_v14  ;;  %v2196_v56 = vsel %vm725_vm8, %v2534_v38, %v724_v13  ;;  %v2209_v46 = vsel %vm739_vm0, %v740_v10, %v738_v55 }
 0x141   : > { %v1495_v49 = vpop.eup %1494  ;;  %v757_v12 = vmul.f32 %v1493_v24, %v2099_v50  ;;  %v2211_v13 = vsel %vm746_vm1, %v747_v41, %v745_v20  ;;  %vm751_vm2 = vcmp.eq.f32.partialorder %v2083_v14, inf  ;;  %vm753_vm3 = vcmp.eq.f32.partialorder %v2083_v14, 0.0 }
 0x142   : > { %v1497_v45 = vpop.eup %1496  ;;  %v764_v43 = vmul.f32 %v1495_v49, %v2106_v18  ;;  %v752_v48 = vsel %vm751_vm2, %v2083_v14, %v750_v39  ;;  %v754_v6 = vand.u32 2147483648, %v2083_v14  ;;  %vm758_vm4 = vcmp.eq.f32.partialorder %v2099_v50, inf }
 0x143   : > { %v1499_v60 = vpop.eup %1498  ;;  %v759_v49 = vsel %vm758_vm4, %v2099_v50, %v757_v12  ;;  %vm765_vm5 = vcmp.eq.f32.partialorder %v2106_v18, inf  ;;  %vm772_vm6 = vcmp.eq.f32.partialorder %v2122_v30, inf  ;;  %1510 = vrsqrt.f32 %v2134_v36 }
 0x144   : > { %v1501_v57 = vpop.eup %1500  ;;  %v771_v24 = vmul.f32 %v1499_v60, %v2122_v30  ;;  %v761_v20 = vand.u32 2147483648, %v2099_v50  ;;  %v766_v39 = vsel %vm765_vm5, %v2106_v18, %v764_v43  ;;  %1512 = vrsqrt.f32 %v2140_v61 }
 0x145   : > { %v1503_v38 = vpop.eup %1502  ;;  %v2227_v60 = vsel %vm753_vm3, %v754_v6, %v752_v48  ;;  %vm760_vm7 = vcmp.eq.f32.partialorder %v2099_v50, 0.0  ;;  %v768_v12 = vand.u32 2147483648, %v2106_v18  ;;  %v775_v27 = vand.u32 2147483648, %v2122_v30 }
 0x146   : > { %v1505_v17 = vpop.eup %1504  ;;  %v773_v10 = vsel %vm772_vm6, %v2122_v30, %v771_v24  ;;  %v2232_v34 = vsel %vm760_vm7, %v761_v20, %v759_v49  ;;  %vm767_vm8 = vcmp.eq.f32.partialorder %v2106_v18, 0.0  ;;  %vm774_vm9 = vcmp.eq.f32.partialorder %v2122_v30, 0.0 }
 0x147   : > { %v1507_v55 = vpop.eup %1506  ;;  %v836_v43 = vsel %vm835_vm10, %v2005_v4, %v2158_v15  ;;  %v2240_v24 = vsel %vm767_vm8, %v768_v12, %v766_v39  ;;  %v2242_v48 = vsel %vm774_vm9, %v775_v27, %v773_v10  ;;  %v2535_v49 = vand.u32 2147483648, %v1908_v7 }
 0x148   : > { %v1509_v41 = vpop.eup %1508  ;;  %vm837_vm11 = vcmp.eq.f32.partialorder %v2005_v4, 0.0  ;;  %vm842_vm12 = vcmp.eq.f32.partialorder %v2034_v35, inf  ;;  %v848_v15 = vmul.f32 %v1497_v45, %v2057_v23  ;;  %v2536_v27 = vand.u32 2147483648, %v1960_v51 }
 0x149   : > { %v2251_v20 = vsel %vm823_vm14, %v2535_v49, %v2131_v37  ;;  %v2537_v10 = vand.u32 2147483648, %v2005_v4  ;;  %v843_v7 = vsel %vm842_vm12, %v2034_v35, %v2163_v19  ;;  %v855_v37 = vmul.f32 %v1501_v57, %v2063_v32 }
 0x14a   : > { %v2261_v39 = vsel %vm830_vm15, %v2536_v27, %v2155_v28  ;;  %vm779_vm10 = vcmp.eq.f32.partialorder %v2134_v36, inf  ;;  %vm844_vm13 = vcmp.eq.f32.partialorder %v2034_v35, 0.0  ;;  %vm849_vm14 = vcmp.eq.f32.partialorder %v2057_v23, inf }
 0x14b   : > { %v2265_v12 = vsel %vm837_vm11, %v2537_v10, %v836_v43  ;;  %vm856_vm0 = vcmp.eq.f32.partialorder %v2063_v32, inf  ;;  %v862_v51 = vmul.f32 %v1503_v38, %v2085_v40  ;;  %vm786_vm15 = vcmp.eq.f32.partialorder %v2140_v61, inf }
 0x14c   : > { %v845_v4 = vand.u32 2147483648, %v2034_v35  ;;  %v850_v28 = vsel %vm849_vm14, %v2057_v23, %v848_v15  ;;  %v857_v19 = vsel %vm856_vm0, %v2063_v32, %v855_v37  ;;  %vm863_vm1 = vcmp.eq.f32.partialorder %v2085_v40, inf }
 0x14d   : > { %v852_v45 = vand.u32 2147483648, %v2057_v23  ;;  %v859_v57 = vand.u32 2147483648, %v2063_v32  ;;  %v864_v43 = vsel %vm863_vm1, %v2085_v40, %v862_v51  ;;  %v869_v49 = vmul.f32 %v1505_v17, %v2101_v2  ;;  %v1511_v27 = vpop.eup %1510 }
 0x14e   : > { %vm851_vm2 = vcmp.eq.f32.partialorder %v2057_v23, 0.0  ;;  %vm858_vm3 = vcmp.eq.f32.partialorder %v2063_v32, 0.0  ;;  %v866_v38 = vand.u32 2147483648, %v2085_v40  ;;  %v876_v15 = vmul.f32 %v1507_v55, %v2116_v54  ;;  %v1513_v10 = vpop.eup %1512 }
 0x14f   : > { %v846_v37 = vsel %vm844_vm13, %v845_v4, %v843_v7  ;;  %v853_v3 = vsel %vm851_vm2, %v852_v45, %v850_v28  ;;  %v860_v6 = vsel %vm858_vm3, %v859_v57, %v857_v19  ;;  %vm865_vm4 = vcmp.eq.f32.partialorder %v2085_v40, 0.0 }
 0x150   : > { %v778_v51 = vmul.f32 %v1511_v27, %v2134_v36  ;;  %v867_v17 = vsel %vm865_vm4, %v866_v38, %v864_v43  ;;  %vm870_vm5 = vcmp.eq.f32.partialorder %v2101_v2, inf  ;;  %vm872_vm6 = vcmp.eq.f32.partialorder %v2101_v2, 0.0 }
 0x151   : > { %v785_v32 = vmul.f32 %v1513_v10, %v2140_v61  ;;  %v871_v23 = vsel %vm870_vm5, %v2101_v2, %v869_v49  ;;  %vm877_vm7 = vcmp.eq.f32.partialorder %v2116_v54, inf  ;;  %v883_v55 = vmul.f32 %v1509_v41, %v2124_v62 }
 0x152   : > { %v873_v7 = vand.u32 2147483648, %v2101_v2  ;;  %v878_v4 = vsel %vm877_vm7, %v2116_v54, %v876_v15  ;;  %vm879_vm8 = vcmp.eq.f32.partialorder %v2116_v54, 0.0  ;;  %vm884_vm9 = vcmp.eq.f32.partialorder %v2124_v62, inf }
 0x153   : > { %vm781_vm11 = vcmp.eq.f32.partialorder %v2134_v36, 0.0  ;;  %v880_v28 = vand.u32 2147483648, %v2116_v54  ;;  %v885_v19 = vsel %vm884_vm9, %v2124_v62, %v883_v55  ;;  %v887_v45 = vand.u32 2147483648, %v2124_v62 }
 0x154   : > { %1514 = vrsqrt.f32 %v2136_v8  ;;  %v780_v41 = vsel %vm779_vm10, %v2134_v36, %v778_v51  ;;  %vm788_vm12 = vcmp.eq.f32.partialorder %v2140_v61, 0.0  ;;  %v874_v57 = vsel %vm872_vm6, %v873_v7, %v871_v23 }
 0x155   : > { %vm886_vm13 = vcmp.eq.f32.partialorder %v2124_v62, 0.0  ;;  %1516 = vrsqrt.f32 %v2142_v47  ;;  %v787_v43 = vsel %vm786_vm15, %v2140_v61, %v785_v32  ;;  %v881_v49 = vsel %vm879_vm8, %v880_v28, %v878_v4 }
 0x156   : > { %v888_v27 = vsel %vm886_vm13, %v887_v45, %v885_v19  ;;  %v906_v38 = vsub.f32 %v2020_v22, %v2028_v53  ;;  %v907_v15 = vsub.f32 %v2170_v58, %v2251_v20  ;;  %v908_v10 = vsub.f32 %v2177_v42, %v2261_v39 }
 0x157   : > { %v909_v23 = vsub.f32 %v2196_v56, %v2265_v12  ;;  %v910_v51 = vsub.f32 %v2204_v59, %v846_v37  ;;  %v911_v55 = vsub.f32 %v2209_v46, %v853_v3  ;;  %v912_v32 = vsub.f32 %v2211_v13, %v860_v6 }
 0x158   : > { %v913_v7 = vsub.f32 %v2227_v60, %v867_v17  ;;  %v914_v4 = vsub.f32 %v2232_v34, %v874_v57  ;;  %vm891_vm10 = vcmp.eq.f32.partialorder %v2136_v8, inf  ;;  %vm893_vm14 = vcmp.eq.f32.partialorder %v2136_v8, 0.0 }
 0x159   : > { %v915_v22 = vsub.f32 %v2240_v24, %v881_v49  ;;  %v916_v53 = vsub.f32 %v2242_v48, %v888_v27  ;;  %v894_v58 = vand.u32 2147483648, %v2136_v8  ;;  %vm898_vm0 = vcmp.eq.f32.partialorder %v2142_v47, inf }
 0x15a   : > { %vm900_vm15 = vcmp.eq.f32.partialorder %v2142_v47, 0.0  ;;  %v1063_v3 = vsub.f32 %v1921_v16, %v1923_v21  ;;  %v901_v42 = vand.u32 2147483648, %v2142_v47  ;;  %v2538_v34 = vsub.f32 %v1896_v1, %v1904_v5 }
 0x15b   : > { %v2346_v59 = vand.u32 2147483647, %v906_v38  ;;  %v1064_v46 = vsub.f32 %v1934_v29, %v1942_v33  ;;  %v2350_v13 = vand.u32 2147483647, %v907_v15  ;;  %v2352_v60 = vand.u32 2147483647, %v908_v10 }
 0x15c   : > { %v2344_v56 = vand.u32 2147483647, %v2538_v34  ;;  %v2354_v24 = vand.u32 2147483647, %v909_v23  ;;  %v1065_v48 = vsub.f32 %v1986_v44, %v2013_v26  ;;  %v2539_v6 = vand.u32 2147483648, %v2134_v36  ;;  %v2541_v34 = vld [vmem:[#allocation9_spill] sm:$0xff] }
 0x15d   : > { %v2364_v5 = vand.u32 2147483647, %v910_v51  ;;  %v2366_v20 = vand.u32 2147483647, %v911_v55  ;;  %v942_v39 = vmax.f32 %v2009_v11, 1e-10 }
 0x15e   : > { %v2362_v1 = vsel %vm781_vm11, %v2539_v6, %v780_v41  ;;  %v1515_v12 = vpop.eup %1514  ;;  %v2540_v37 = vand.u32 2147483648, %v2140_v61  ;;  %v2375_v28 = vand.u32 2147483647, %v912_v32  ;;  %v2377_v19 = vand.u32 2147483647, %v913_v7  ;;  %v2547_v29 = vld [vmem:[#allocation6_spill] sm:$0xff] }
 0x15f   : > { %v943_v45 = vmax.f32 %v2055_v63, 1e-10  ;;  %v1517_v41 = vpop.eup %1516  ;;  %v890_v57 = vmul.f32 %v1515_v12, %v2136_v8  ;;  %v2381_v49 = vand.u32 2147483647, %v914_v4  ;;  %v2383_v27 = vand.u32 2147483647, %v915_v22 }
 0x160   : > { %v2373_v17 = vsel %vm788_vm12, %v2540_v37, %v787_v43  ;;  %v944_v11 = vmax.f32 %v2061_v31, 1e-10  ;;  %v897_v38 = vmul.f32 %v1517_v41, %v2142_v47  ;;  %v945_v43 = vmax.f32 %v2083_v14, 1e-10  ;;  %v2548_v26 = vld [vmem:[#allocation7_spill] sm:$0xff] }
 0x161   : > { %v946_v15 = vmax.f32 %v2099_v50, 1e-10  ;;  %v947_v10 = vmax.f32 %v2106_v18, 1e-10  ;;  %v892_v63 = vsel %vm891_vm10, %v2136_v8, %v890_v57  ;;  %v960_v23 = vmul.f32 0.6931472, %v2059_v0 }
 0x162   : > { %v962_v51 = vmul.f32 0.6931472, %v2093_v9  ;;  %1518 = vlog2.f32 %v942_v39  ;;  %v2397_v31 = vsel %vm893_vm14, %v894_v58, %v892_v63  ;;  %v899_v14 = vsel %vm898_vm0, %v2142_v47, %v897_v38  ;;  %v2542_v39 = vld [vmem:[#allocation10_spill] sm:$0xff]  ;;  %v2545_v57 = vld [vmem:[#allocation13_spill] sm:$0xff] }
 0x163   : > { %v964_v50 = vmul.f32 0.6931472, %v2118_v52  ;;  %1520 = vlog2.f32 %v943_v45  ;;  %v2405_v18 = vsel %vm900_vm15, %v901_v42, %v899_v14  ;;  %v917_v0 = vsub.f32 %v2362_v1, %v2397_v31  ;;  %v2544_v45 = vld [vmem:[#allocation12_spill] sm:$0xff] }
 0x164   : > { %v948_v9 = vmax.f32 %v2122_v30, 1e-10  ;;  %1522 = vlog2.f32 %v944_v11  ;;  %v918_v55 = vsub.f32 %v2373_v17, %v2405_v18  ;;  %v2412_v32 = vand.u32 2147483647, %v916_v53 }
 0x165   : > { %v949_v7 = vmax.f32 %v2134_v36, 1e-10  ;;  %1524 = vlog2.f32 %v945_v43  ;;  %v950_v52 = vmax.f32 %v2140_v61, 1e-10  ;;  %v986_v4 = vmul.f32 0.4342945, %v2022_v25 }
 0x166   : > { %1526 = vlog2.f32 %v946_v15  ;;  %v987_v22 = vmul.f32 0.4342945, %v960_v23  ;;  %v988_v58 = vmul.f32 0.4342945, %v962_v51  ;;  %v989_v42 = vmul.f32 0.4342945, %v964_v50 }
 0x167   : > { %1528 = vlog2.f32 %v947_v10  ;;  %v1006_v30 = vmax.f32 %v2034_v35, 1e-10  ;;  %v1007_v6 = vmax.f32 %v2541_v34, 1e-10  ;;  %v1008_v53 = vmax.f32 %v2542_v39, 1e-10 }
 0x168   : > { %1530 = vlog2.f32 %v948_v9  ;;  %v1009_v12 = vmax.f32 %v2085_v40, 1e-10  ;;  %v1010_v36 = vmax.f32 %v2101_v2, 1e-10  ;;  %v2543_v61 = vld [vmem:[#allocation11_spill] sm:$0xff]  ;;  %v2546_v35 = vld [vmem:[#allocation8_spill] sm:$0xff] }
 0x169   : > { %1532 = vlog2.f32 %v949_v7  ;;  %v1024_v37 = vmul.f32 0.6931472, %v2543_v61  ;;  %v1026_v25 = vmul.f32 0.6931472, %v2544_v45  ;;  %v1011_v41 = vmax.f32 %v2116_v54, 1e-10 }
 0x16a   : > { %1534 = vlog2.f32 %v950_v52  ;;  %v1028_v11 = vmul.f32 0.6931472, %v2545_v57  ;;  %v1050_v38 = vmul.f32 0.4342945, %v2546_v35  ;;  %v1012_v43 = vmax.f32 %v2124_v62, 1e-10 }
 0x16b   : > { %1536 = vlog2.f32 %v1006_v30  ;;  %v1051_v15 = vmul.f32 0.4342945, %v1024_v37  ;;  %v1052_v10 = vmul.f32 0.4342945, %v1026_v25  ;;  %v1013_v63 = vmax.f32 %v2136_v8, 1e-10 }
 0x16c   : > { %v1519_v40 = vpop.eup %1518  ;;  %1538 = vlog2.f32 %v1007_v6  ;;  %v1053_v2 = vmul.f32 0.4342945, %v1028_v11  ;;  %v1066_v23 = vsub.f32 %v986_v4, %v1050_v38  ;;  %v1014_v7 = vmax.f32 %v2142_v47, 1e-10 }
 0x16d   : > { %v1521_v51 = vpop.eup %1520  ;;  %v966_v14 = vmul.f32 0.6931472, %v1519_v40  ;;  %1540 = vlog2.f32 %v1008_v53  ;;  %v1067_v50 = vsub.f32 %v987_v22, %v1051_v15  ;;  %v1068_v54 = vsub.f32 %v988_v58, %v1052_v10 }
 0x16e   : > { %v1523_v9 = vpop.eup %1522  ;;  %1542 = vlog2.f32 %v1009_v12  ;;  %v1069_v52 = vsub.f32 %v989_v42, %v1053_v2  ;;  %v1079_v62 = vand.u32 2147483647, %v1063_v3  ;;  %v968_v34 = vmul.f32 0.6931472, %v1521_v51 }
 0x16f   : > { %v1525_v30 = vpop.eup %1524  ;;  %1544 = vlog2.f32 %v1010_v36  ;;  %v1080_v8 = vand.u32 2147483647, %v1064_v46  ;;  %v1081_v4 = vand.u32 2147483647, %v1065_v48  ;;  %v970_v58 = vmul.f32 0.6931472, %v1523_v9 }
 0x170   : > { %v1527_v22 = vpop.eup %1526  ;;  %v990_v47 = vmul.f32 0.4342945, %v966_v14  ;;  %1546 = vlog2.f32 %v1011_v41  ;;  %v1082_v42 = vand.u32 2147483647, %v1066_v23  ;;  %v972_v39 = vmul.f32 0.6931472, %v1525_v30 }
 0x171   : > { %v1529_v6 = vpop.eup %1528  ;;  %1548 = vlog2.f32 %v1012_v43  ;;  %v1083_v16 = vand.u32 2147483647, %v1067_v50  ;;  %v1084_v21 = vand.u32 2147483647, %v1068_v54  ;;  %v974_v53 = vmul.f32 0.6931472, %v1527_v22 }
 0x172   : > { %v1531_v3 = vpop.eup %1530  ;;  %1550 = vlog2.f32 %v1013_v63  ;;  %v1085_v12 = vand.u32 2147483647, %v1069_v52  ;;  %v1111_v33 = vadd.f32 %v1079_v62, %v2547_v29  ;;  %v976_v36 = vmul.f32 0.6931472, %v1529_v6 }
 0x173   : > { %v1533_v46 = vpop.eup %1532  ;;  %v991_v44 = vmul.f32 0.4342945, %v968_v34  ;;  %1552 = vlog2.f32 %v1014_v7  ;;  %v1112_v48 = vadd.f32 %v1080_v8, %v2548_v26  ;;  %v978_v37 = vmul.f32 0.6931472, %v1531_v3 }
 0x174   : > { %v1535_v61 = vpop.eup %1534  ;;  %v992_v45 = vmul.f32 0.4342945, %v970_v58  ;;  %v1113_v25 = vadd.f32 %v1081_v4, %v2344_v56  ;;  %v1114_v41 = vadd.f32 %v1082_v42, %v2346_v59  ;;  %v980_v11 = vmul.f32 0.6931472, %v1533_v46 }
 0x175   : > { %v1537_v57 = vpop.eup %1536  ;;  %v993_v35 = vmul.f32 0.4342945, %v972_v39  ;;  %v1115_v38 = vadd.f32 %v1083_v16, %v2350_v13  ;;  %v2445_v43 = vadd.f32 %v1084_v21, %v2352_v60  ;;  %v994_v10 = vmul.f32 0.4342945, %v974_v53 }
 0x176   : > { %v1539_v15 = vpop.eup %1538  ;;  %v1030_v40 = vmul.f32 0.6931472, %v1537_v57  ;;  %v2448_v63 = vadd.f32 %v1085_v12, %v2354_v24  ;;  %v1178_v2 = vadd.f32 %v1112_v48, %v1111_v33  ;;  %v982_v51 = vmul.f32 0.6931472, %v1535_v61 }
 0x177   : > { %v1541_v23 = vpop.eup %1540  ;;  %v995_v56 = vmul.f32 0.4342945, %v976_v36  ;;  %v1032_v14 = vmul.f32 0.6931472, %v1539_v15  ;;  %v996_v50 = vmul.f32 0.4342945, %v978_v37 }
 0x178   : > { %v1543_v59 = vpop.eup %1542  ;;  %v1034_v54 = vmul.f32 0.6931472, %v1541_v23  ;;  %v1054_v9 = vmul.f32 0.4342945, %v1030_v40  ;;  %v1179_v7 = vadd.f32 %v1178_v2, %v1113_v25  ;;  %v997_v52 = vmul.f32 0.4342945, %v980_v11 }
 0x179   : > { %v1545_v13 = vpop.eup %1544  ;;  %v1036_v60 = vmul.f32 0.6931472, %v1543_v59  ;;  %v1055_v62 = vmul.f32 0.4342945, %v1032_v14  ;;  %v998_v58 = vmul.f32 0.4342945, %v982_v51 }
 0x17a   : > { %v1547_v30 = vpop.eup %1546  ;;  %v1038_v34 = vmul.f32 0.6931472, %v1545_v13  ;;  %v1056_v8 = vmul.f32 0.4342945, %v1034_v54  ;;  %v1070_v4 = vsub.f32 %v990_v47, %v1054_v9  ;;  %v1180_v24 = vadd.f32 %v1179_v7, %v1114_v41 }
 0x17b   : > { %v1549_v22 = vpop.eup %1548  ;;  %v1040_v42 = vmul.f32 0.6931472, %v1547_v30  ;;  %v1057_v6 = vmul.f32 0.4342945, %v1036_v60  ;;  %v1071_v39 = vsub.f32 %v991_v44, %v1055_v62 }
 0x17c   : > { %v1551_v16 = vpop.eup %1550  ;;  %v1042_v21 = vmul.f32 0.6931472, %v1549_v22  ;;  %v1058_v3 = vmul.f32 0.4342945, %v1038_v34  ;;  %v1072_v53 = vsub.f32 %v992_v45, %v1056_v8  ;;  %v1086_v12 = vand.u32 2147483647, %v1070_v4 }
 0x17d   : > { %v1553_v29 = vpop.eup %1552  ;;  %v1044_v33 = vmul.f32 0.6931472, %v1551_v16  ;;  %v1059_v46 = vmul.f32 0.4342945, %v1040_v42  ;;  %v1073_v36 = vsub.f32 %v993_v35, %v1057_v6  ;;  %v1087_v26 = vand.u32 2147483647, %v1071_v39 }
 0x17e   : > { %v1046_v48 = vmul.f32 0.6931472, %v1553_v29  ;;  %v1060_v61 = vmul.f32 0.4342945, %v1042_v21  ;;  %v1074_v37 = vsub.f32 %v994_v10, %v1058_v3  ;;  %v1088_v47 = vand.u32 2147483647, %v1072_v53 }
 0x17f   : > { %v1061_v25 = vmul.f32 0.4342945, %v1044_v33  ;;  %v1075_v41 = vsub.f32 %v995_v56, %v1059_v46  ;;  %v1089_v57 = vand.u32 2147483647, %v1073_v36  ;;  %v1118_v11 = vadd.f32 %v1086_v12, %v2364_v5 }
 0x180   : > { %v1062_v44 = vmul.f32 0.4342945, %v1046_v48  ;;  %v1076_v15 = vsub.f32 %v996_v50, %v1060_v61  ;;  %v1090_v40 = vand.u32 2147483647, %v1074_v37  ;;  %v1119_v45 = vadd.f32 %v1087_v26, %v2366_v20 }
 0x181   : > { %v1077_v2 = vsub.f32 %v997_v52, %v1061_v25  ;;  %v1091_v23 = vand.u32 2147483647, %v1075_v41  ;;  %v1120_v51 = vadd.f32 %v1088_v47, %v2375_v28  ;;  %v1121_v35 = vadd.f32 %v1089_v57, %v2377_v19 }
 0x182   : > { %v1078_v14 = vsub.f32 %v998_v58, %v1062_v44  ;;  %v1092_v59 = vand.u32 2147483647, %v1076_v15  ;;  %v1122_v10 = vadd.f32 %v1090_v40, %v2381_v49  ;;  %v1181_v54 = vadd.f32 %v1180_v24, %v1115_v38 }
 0x183   : > { %v933_v5 = vand.u32 2147483647, %v917_v0  ;;  %v1093_v56 = vand.u32 2147483647, %v1077_v2  ;;  %v1123_v50 = vadd.f32 %v1091_v23, %v2383_v27  ;;  %v934_v20 = vand.u32 2147483647, %v918_v55 }
 0x184   : > { %v1094_v9 = vand.u32 2147483647, %v1078_v14  ;;  %v1124_v28 = vadd.f32 %v1092_v59, %v2412_v32  ;;  %v1182_v19 = vadd.f32 %v1181_v54, %v2445_v43 }
 0x185   : > { %v1125_v7 = vadd.f32 %v1093_v56, %v933_v5 }
 0x186   : > { %v1126_v13 = vadd.f32 %v1094_v9, %v934_v20  ;;  %v1183_v49 = vadd.f32 %v1182_v19, %v2448_v63 }
 0x188   : > { %v1184_v38 = vadd.f32 %v1183_v49, %v1118_v11 }
 0x18a   : > { %v1185_v52 = vadd.f32 %v1184_v38, %v1119_v45 }
 0x18c   : > { %v1186_v1 = vadd.f32 %v1185_v52, %v1120_v51 }
 0x18e   : > { %v1187_v31 = vadd.f32 %v1186_v1, %v1121_v35 }
 0x190   : > { %v1188_v0 = vadd.f32 %v1187_v31, %v1122_v10 }
 0x192   : > { %v1189_v27 = vadd.f32 %v1188_v0, %v1123_v50 }
 0x194   : > { %v1190_v60 = vadd.f32 %v1189_v27, %v1124_v28 }
 0x196   : > { %v1191_v17 = vadd.f32 %v1190_v60, %v1125_v7 }
 0x198   : > { %v1192_v18 = vadd.f32 %v1191_v17, %v1126_v13 }
 0x19a   : > { %1193 = vadd.xlane.f32.xlu0 %v1192_v18 }
 0x227   : > { %v1194_v55 = vpop.xlane.xlu0 %1193 }
 0x228   : > { %v1195_v32 = vrot.slane %v1194_v55, 4 }
 0x22a   : > { %v1196_v62 = vadd.f32 %v1195_v32, %v1194_v55 }
 0x22c   : > { %v1197_v43 = vrot.slane %v1196_v62, 2 }
 0x22e   : > { %v1198_v30 = vadd.f32 %v1197_v43, %v1196_v62 }
 0x230   : > { %v1199_v34 = vrot.slane %v1198_v30, 1 }
 0x232   : > { %v1200_v63 = vadd.f32 %v1199_v34, %v1198_v30 }
 0x234   : > { %1340 = vpush %v1200_v63 }
 0x265   : > { %s1341_s30 = spop %1340 }
 0x266   : > { %v1202_v8 = vstv %s1341_s30 }
 0x267   : > { %1204 = vst [vmem:[%s152_s27] sm:$0x1] %v1202_v8 }
 0x268   : > { %1567 = shalt.err (!%p1564_p5)
}
 0x269   : > { %s1568_s16 = scalar_lea.hbm %s2472_s5, 16  ;;  %s1572_s23 = scalar_lea.hbm %s2519_s2, 32 }
 0x26a   : > { %p1569_p6 = scmp.ne.s32.totalorder %s2472_s5, %s1568_s16  ;;  %p1573_p10 = scmp.lt.u32.totalorder %s2472_s5, %s2519_s2 }
 0x26b   : > { %p1574_p11 = scmp.lt.u32.totalorder %s1572_s23, %s1568_s16  ;;  %p1576_p13 = scmp.lt.u32.totalorder %s1568_s16, %s2472_s5 }
 0x26c   : > { %p1570_p7 = pnand %p1569_p6, %p1691_p4 }
 0x26d   : > { %p1575_p12 = por %p1574_p11, %p1573_p10 }
 0x26e   : > { %p1571_p9 = pneg %p1570_p7 }
 0x26f   : > { %p1577_p0 = por %p1576_p13, %p1575_p12 }
 0x271   : > { %p1578_p1 = pnand %p1577_p0, %p1571_p9 }
 0x273   : > { %1581 = shalt.err (!%p1578_p1)
}
 0x274   : > { %1342 = dma.vmem_to_hbm [thread:$0]  (%p1691_p4), %s2467_s28, 16, %s2472_s5, %s1206_s6  }
 0x275 PF: > { %p1348_p2 = scmp.ge.s32.totalorder %s1632_s14, 2  ;;  %s1230_s26 = sand.u32 1, %s1612_s9  }
 0x276   : > { %s1231_s27 = scalar_lea.sflag [#allocation4], %s1230_s26 }
 0x277   : > { %p1345_p3 = pnand %p1348_p2, %p1698_p8 }
 0x279   : > { %1607 = dma.done.wait (!%p1345_p3), %s1231_s27, 16  }
 0x27a   : > { %1609 = vsyncadd (!%p1345_p3), %s1231_s27, 4294967280  ;;  %s15_s14 = sadd.s32 1, %s1632_s14   ;;  %s2549_s9 = smov %s1616_s10 }
 0x27b   : > { %p12_p5 = scmp.ge.s32.totalorder %s15_s14, 4   ;;  %s2550_s10 = smov %s1620_s11 }
 0x27c   : > { %s2551_s11 = smov %s1704_s22  ;;  %s2552_s12 = smov %s1628_s13 }
 0x27d   : > { %s2553_s13 = smov %s2555_s17  ;;  %14 = sbr.rel (!%p12_p5) target bundleno = 4 (0x4), region = 71 }
 0x284   :  { %1235 = vsyncpa [#allocation4], 1 }
 0x285   :  { %1237 = vsyncpa [#allocation4 + $0x1], 1 }

</bundles_post_ra>
